<compile_context>
chip_gen: v6e
topology: v6e:2x2x1
jax: 0.10.0
libtpu: 0.0.40
codegen_flags: <defaults>
</compile_context>

<pallas_src>
import functools

import jax
import jax.numpy as jnp
from jax import lax
from jax.experimental import pallas as pl
from jax.experimental.pallas import tpu as pltpu


# ---------------------------------------------------------------------------
# Fused LSTM + GlobalAttention('dot') kernel — one batch shard per grid step.
# ---------------------------------------------------------------------------
def _cond_decoder_kernel(emb_ref, ctx_ref, h0_ref, c0_ref,
                         wih_ref, whh_ref, b_ref, wc_ref, wq_ref,
                         out_ref, align_ref, hN_ref, cN_ref):
    """Kernel-view shapes (one batch shard of size Bs):
      emb_ref : (T, Bs, I)  bf16      ctx_ref : (S, Bs, H) bf16
      h0_ref, c0_ref, hN_ref, cN_ref : (Bs, H) f32
      wih_ref : (I, 4H) bf16   whh_ref : (H, 4H) bf16   b_ref : (1, 4H) f32
      wc_ref, wq_ref : (H, H) bf16
      out_ref : (T, Bs, H) f32   align_ref : (T, Bs, S) f32
    """
    f32, bf16 = jnp.float32, jnp.bfloat16
    T, Bs, I = emb_ref.shape
    S = ctx_ref.shape[0]
    H = h0_ref.shape[1]

    # ---- Phase 1: input projection hoisted out of the recurrence -----------
    # One tall bf16 MXU matmul (f32 accumulate); bias broadcast exactly once.
    x2 = emb_ref[...].reshape(T * Bs, I)          # minor dim preserved -> cheap reshape
    xp = jnp.dot(x2, wih_ref[...], preferred_element_type=f32) + b_ref[...]   # (T*Bs,4H) f32

    # ---- Phase 2: sequential recurrence (only h @ W_hh^T inside the loop) --
    whh = whh_ref[...]                            # (H, 4H) bf16, loaded once
    h = h0_ref[...]                               # (Bs, H) f32 state (elementwise stays f32)
    c = c0_ref[...]
    hs = []
    # T is small & static -> full unroll; hidden states live in vregs (no scratch stores).
    # TODO(synk): for large T, switch to lax.fori_loop(unroll=True) + pl.ds offsets to
    #             bound live ranges (only 64 vregs per core).
    for t in range(T):
        g = xp[t * Bs:(t + 1) * Bs, :] + jnp.dot(h.astype(bf16), whh,
                                                 preferred_element_type=f32)  # (Bs,4H) f32
        # One full-width sigmoid over the whole (Bs,4H) vreg (i,f,o gates) and one tanh
        # on the candidate block: 2 EUP passes instead of 4 quarter-lane activations.
        sig = jax.nn.sigmoid(g)
        g_g = jnp.tanh(g[:, 2 * H:3 * H])
        c = sig[:, H:2 * H] * c + sig[:, 0:H] * g_g      # f32 elementwise (v5e-safe)
        h = sig[:, 3 * H:4 * H] * jnp.tanh(c)
        hs.append(h)
    hN_ref[...] = h                               # final LSTM state written exactly once
    cN_ref[...] = c
    q = jnp.stack(hs, axis=0)                     # (T, Bs, H) f32 — one dense materialization
    q_bf = q.astype(bf16)

    # ---- Phase 3: GlobalAttention('dot', transform_out=True) ---------------
    # Exact per-example attention: O(T*S) work, no cross-batch mask, no (T*B, S*B)
    # score blow-up; outputs stay time-major so no transposes anywhere.
    # TODO(synk): at real T,S tile this phase over T blocks and pipeline ctx over S
    #             blocks (flash-style online softmax) to respect v7x's 64 MiB VMEM.
    ctx = ctx_ref[...]                            # (S, Bs, H) bf16
    wc = wc_ref[...]
    wq = wq_ref[...]
    outs, aligns = [], []
    for b in range(Bs):                           # Bs is static & tiny (per-core shard)
        qb = q_bf[:, b, :]                        # (T, H)
        cb = ctx[:, b, :]                         # (S, H)
        # scores = q @ ctx^T: contract last dims directly, no transpose materialized.
        scores = lax.dot_general(qb, cb, (((1,), (1,)), ((), ())),
                                 preferred_element_type=f32)                  # (T, S) f32
        m = jnp.max(scores, axis=-1, keepdims=True)
        e = jnp.exp(scores - m)
        # Softmax divide moved to the EUP slot (approx reciprocal), f32 throughout.
        align = e * pl.reciprocal(jnp.sum(e, axis=-1, keepdims=True), approx=True)
        cvec = jnp.dot(align.astype(bf16), cb, preferred_element_type=f32)    # (T, H)
        # tanh(Linear_out([c ; q])) == tanh(c @ Wc^T + q @ Wq^T): no concat needed.
        pre = (jnp.dot(cvec.astype(bf16), wc, preferred_element_type=f32)
               + jnp.dot(qb, wq, preferred_element_type=f32))
        outs.append(jnp.tanh(pre))
        aligns.append(align)
    # Single dense full-block stores (no per-row masked partial stores).
    # TODO(synk): at real sizes pad H and S up to multiples of 128 lanes (unmasked vst).
    out_ref[...] = jnp.stack(outs, axis=1)        # (T, Bs, H)
    align_ref[...] = jnp.stack(aligns, axis=1)    # (T, Bs, S)


def cond_decoder_pallas(emb, context, h0, c0, wihT, whhT, bias, wcT, wqT):
    """emb: (T, B, I) f32; context: (S, B, H) f32; h0/c0: (B, H) f32.
    Returns (outputs (T,B,H), align (T,B,S), hN (B,H), cN (B,H)), all f32."""
    T, B, I = emb.shape
    S = context.shape[0]
    H = h0.shape[-1]

    # Batch shards: one independent LSTM+attention stream per shard. Two shards map
    # one-to-one onto v7x's two TensorCores ("parallel"); on v5e/v6e the grid is a
    # cheap serial loop.
    NS = 2 if B % 2 == 0 else 1
    Bs = B // NS

    # Free, contiguity-preserving reshapes: split batch into (shard, per-shard batch)
    # so the grid axis never touches the (8,128)-constrained trailing dims and no
    # HBM transposes are needed. MXU operands are cast to bf16 here (halves DMA).
    emb4 = emb.astype(jnp.bfloat16).reshape(T, NS, Bs, I)
    ctx4 = context.astype(jnp.bfloat16).reshape(S, NS, Bs, H)
    h03 = h0.reshape(NS, Bs, H)
    c03 = c0.reshape(NS, Bs, H)

    vmem = pltpu.MemorySpace.VMEM
    in_specs = [
        pl.BlockSpec((T, None, Bs, I), lambda s: (0, s, 0, 0), memory_space=vmem),  # emb
        pl.BlockSpec((S, None, Bs, H), lambda s: (0, s, 0, 0), memory_space=vmem),  # ctx
        pl.BlockSpec((None, Bs, H), lambda s: (s, 0, 0), memory_space=vmem),        # h0
        pl.BlockSpec((None, Bs, H), lambda s: (s, 0, 0), memory_space=vmem),        # c0
        pl.BlockSpec((I, 4 * H), lambda s: (0, 0), memory_space=vmem),              # W_ih^T
        pl.BlockSpec((H, 4 * H), lambda s: (0, 0), memory_space=vmem),              # W_hh^T
        pl.BlockSpec((1, 4 * H), lambda s: (0, 0), memory_space=vmem),              # bias
        pl.BlockSpec((H, H), lambda s: (0, 0), memory_space=vmem),                  # Wc^T
        pl.BlockSpec((H, H), lambda s: (0, 0), memory_space=vmem),                  # Wq^T
    ]
    out_specs = [
        pl.BlockSpec((T, None, Bs, H), lambda s: (0, s, 0, 0), memory_space=vmem),  # attn_h
        pl.BlockSpec((T, None, Bs, S), lambda s: (0, s, 0, 0), memory_space=vmem),  # align
        pl.BlockSpec((None, Bs, H), lambda s: (s, 0, 0), memory_space=vmem),        # h_N
        pl.BlockSpec((None, Bs, H), lambda s: (s, 0, 0), memory_space=vmem),        # c_N
    ]
    out_shape = (
        jax.ShapeDtypeStruct((T, NS, Bs, H), jnp.float32),
        jax.ShapeDtypeStruct((T, NS, Bs, S), jnp.float32),
        jax.ShapeDtypeStruct((NS, Bs, H), jnp.float32),
        jax.ShapeDtypeStruct((NS, Bs, H), jnp.float32),
    )
    cost = pl.CostEstimate(
        flops=int(2 * T * B * 4 * H * (I + H)        # input + recurrent projections
                  + 4 * B * T * S * H                # scores + context readout
                  + 4 * B * T * H * H),              # output projection (Wc, Wq)
        transcendentals=int(T * B * 6 * H            # gate sigmoid/tanh
                            + B * T * (S + 1)        # softmax exp + reciprocal
                            + B * T * H),            # output tanh
        bytes_accessed=int(emb4.size * 2 + ctx4.size * 2
                           + (h03.size + c03.size) * 4
                           + (wihT.size + whhT.size + wcT.size + wqT.size) * 2
                           + bias.size * 4
                           + (T * B * H + T * B * S + 2 * B * H) * 4),
    )

    out4, align4, hN3, cN3 = pl.pallas_call(
        _cond_decoder_kernel,
        out_shape=out_shape,
        grid_spec=pltpu.PrefetchScalarGridSpec(
            num_scalar_prefetch=0, grid=(NS,),
            in_specs=in_specs, out_specs=out_specs),
        compiler_params=pltpu.CompilerParams(
            dimension_semantics=("parallel",),            # shard -> its own TC on v7x
            vmem_limit_bytes=32 * 1024 * 1024),           # fits every generation's budget
        cost_estimate=cost,
    )(emb4, ctx4, h03, c03, wihT, whhT, bias, wcT, wqT)

    # Free reshapes back to the module's time-major layout.
    return (out4.reshape(T, B, H), align4.reshape(T, B, S),
            hN3.reshape(B, H), cN3.reshape(B, H))


# ---------------------------------------------------------------------------
# CondDecoder (params + forward glue)
# ---------------------------------------------------------------------------
class CondDecoderPallas:
    def __init__(self, input_size, hidden_size, key):
        self.input_size = input_size
        self.hidden_size = hidden_size
        H = hidden_size
        k = jax.random.split(key, 5)
        stdv = 1.0 / jnp.sqrt(hidden_size)
        # PyTorch-layout f32 parameters (kept for the pure-JAX reference).
        self.w_ih = jax.random.uniform(k[0], (4 * H, input_size), jnp.float32, -stdv, stdv)
        self.w_hh = jax.random.uniform(k[1], (4 * H, H), jnp.float32, -stdv, stdv)
        self.b_ih = jax.random.uniform(k[2], (4 * H,), jnp.float32, -stdv, stdv)
        self.b_hh = jax.random.uniform(k[3], (4 * H,), jnp.float32, -stdv, stdv)
        self.w_out = jax.random.uniform(k[4], (H, 2 * H), jnp.float32, -stdv, stdv)
        # Kernel-layout parameters, prepped ONCE: transposed, bias fused, and MXU
        # operands cast to bf16 (accumulation stays f32 in-kernel).
        self.wihT = jnp.transpose(self.w_ih).astype(jnp.bfloat16)       # (I, 4H)
        self.whhT = jnp.transpose(self.w_hh).astype(jnp.bfloat16)       # (H, 4H)
        self.bias = (self.b_ih + self.b_hh)[None, :]                    # (1, 4H) f32
        self.wcT = jnp.transpose(self.w_out[:, :H]).astype(jnp.bfloat16)  # (H, H), multiplies c
        self.wqT = jnp.transpose(self.w_out[:, H:]).astype(jnp.bfloat16)  # (H, H), multiplies q

    def init_decoder_state(self, context, enc_hidden):
        # bidirectional_encoder=False -> _fix_enc_hidden is identity
        return tuple(enc_hidden)  # (h0, c0), each (num_layers=1, B, H)

    @functools.partial(jax.jit, static_argnums=0)
    def forward(self, emb, context, hidden):
        # word_dropout with p=0 (eval) -> identity
        h0, c0 = hidden
        outputs, align, hN, cN = cond_decoder_pallas(
            emb, context, h0[0], c0[0],
            self.wihT, self.whhT, self.bias, self.wcT, self.wqT)
        new_hidden = (hN[None], cN[None])      # (1, B, H) each
        attns = {"std": align}                 # (T, B, S)
        return outputs, new_hidden, attns      # outputs: (T, B, H)


# ---------------------------------------------------------------------------
# Pure-JAX f32 reference for sanity checking the fused bf16-MXU kernel.
# ---------------------------------------------------------------------------
def _reference(dec, emb, context, hidden):
    h0, c0 = hidden[0][0], hidden[1][0]
    H = dec.hidden_size

    def step(carry, x_t):
        h, c = carry
        g = x_t @ dec.w_ih.T + dec.b_ih + h @ dec.w_hh.T + dec.b_hh
        i = jax.nn.sigmoid(g[:, :H]); f = jax.nn.sigmoid(g[:, H:2 * H])
        gg = jnp.tanh(g[:, 2 * H:3 * H]); o = jax.nn.sigmoid(g[:, 3 * H:])
        c = f * c + i * gg
        h = o * jnp.tanh(c)
        return (h, c), h

    (_, _), rnn_out = jax.lax.scan(step, (h0, c0), emb)
    q = jnp.transpose(rnn_out, (1, 0, 2))       # (B,T,H)
    ctx = jnp.transpose(context, (1, 0, 2))     # (B,S,H)
    scores = jnp.einsum("bth,bsh->bts", q, ctx)
    align = jax.nn.softmax(scores, axis=-1)
    c = jnp.einsum("bts,bsh->bth", align, ctx)
    attn_h = jnp.tanh(jnp.concatenate([c, q], -1) @ dec.w_out.T)
    return (jnp.transpose(attn_h, (1, 0, 2)), jnp.transpose(align, (1, 0, 2)))


if __name__ == "__main__":
    T, S, B, I, H = 8, 16, 2, 16, 32
    key = jax.random.PRNGKey(0)
    kp, ke, kc, kh, kcc = jax.random.split(key, 5)

    dec = CondDecoderPallas(input_size=I, hidden_size=H, key=kp)

    emb = jax.random.normal(ke, (T, B, I), jnp.float32)         # (len, batch, nfeats)
    context = jax.random.normal(kc, (S, B, H), jnp.float32)     # (src_len, batch, hidden)
    enc_h = jax.random.normal(kh, (1, B, H), jnp.float32)       # (layers, batch, hidden)
    enc_c = jax.random.normal(kcc, (1, B, H), jnp.float32)

    state = dec.init_decoder_state(context, (enc_h, enc_c))
    outputs, new_state, attns = dec.forward(emb, context, state)
    jax.block_until_ready((outputs, new_state, attns["std"]))

    ref_out, ref_attn = _reference(dec, emb, context, state)
    assert outputs.shape == (T, B, H)
    assert attns["std"].shape == (T, B, S)
    assert new_state[0].shape == (1, B, H) and new_state[1].shape == (1, B, H)
    # bf16 MXU operands + approx reciprocal -> loosened tolerance (review guidance ~1e-2).
    assert jnp.allclose(outputs, ref_out, atol=3e-2, rtol=3e-2)
    assert jnp.allclose(attns["std"], ref_attn, atol=3e-2, rtol=3e-2)

    print("KERNEL_OK")
</pallas_src>

<mosaic_0001>
module attributes {stable_mosaic.version = 11 : i64} {
  func.func @_cond_decoder_kernel(%arg0: i32, %arg1: memref<8x1x1x16xbf16, #tpu.memory_space<vmem>>, %arg2: memref<16x1x1x32xbf16, #tpu.memory_space<vmem>>, %arg3: memref<1x1x32xf32, #tpu.memory_space<vmem>>, %arg4: memref<1x1x32xf32, #tpu.memory_space<vmem>>, %arg5: memref<16x128xbf16, #tpu.memory_space<vmem>>, %arg6: memref<32x128xbf16, #tpu.memory_space<vmem>>, %arg7: memref<1x128xf32, #tpu.memory_space<vmem>>, %arg8: memref<32x32xbf16, #tpu.memory_space<vmem>>, %arg9: memref<32x32xbf16, #tpu.memory_space<vmem>>, %arg10: memref<8x1x1x32xf32, #tpu.memory_space<vmem>>, %arg11: memref<8x1x1x16xf32, #tpu.memory_space<vmem>>, %arg12: memref<1x1x32xf32, #tpu.memory_space<vmem>>, %arg13: memref<1x1x32xf32, #tpu.memory_space<vmem>>) attributes {dimension_semantics = [#tpu.dimension_semantics<parallel>], iteration_bounds = array<i64: 2>, scalar_prefetch = 0 : i64, scratch_operands = 0 : i64, tpu.core_type = #tpu.core_type<tc>, window_params = [{transform_indices = @transform_0, window_bounds = array<i64: 8, 1, 1, 16>}, {transform_indices = @transform_1, window_bounds = array<i64: 16, 1, 1, 32>}, {transform_indices = @transform_2, window_bounds = array<i64: 1, 1, 32>}, {transform_indices = @transform_3, window_bounds = array<i64: 1, 1, 32>}, {pipeline_mode = #tpu.pipeline_mode<synchronous>, transform_indices = @transform_4, window_bounds = array<i64: 16, 128>}, {pipeline_mode = #tpu.pipeline_mode<synchronous>, transform_indices = @transform_5, window_bounds = array<i64: 32, 128>}, {pipeline_mode = #tpu.pipeline_mode<synchronous>, transform_indices = @transform_6, window_bounds = array<i64: 1, 128>}, {pipeline_mode = #tpu.pipeline_mode<synchronous>, transform_indices = @transform_7, window_bounds = array<i64: 32, 32>}, {pipeline_mode = #tpu.pipeline_mode<synchronous>, transform_indices = @transform_8, window_bounds = array<i64: 32, 32>}, {transform_indices = @transform_9, window_bounds = array<i64: 8, 1, 1, 32>}, {transform_indices = @transform_10, window_bounds = array<i64: 8, 1, 1, 16>}, {transform_indices = @transform_11, window_bounds = array<i64: 1, 1, 32>}, {transform_indices = @transform_12, window_bounds = array<i64: 1, 1, 32>}]} {
    %c0 = arith.constant 0 : index
    %c0_0 = arith.constant 0 : index
    %c0_1 = arith.constant 0 : index
    %c0_2 = arith.constant 0 : index
    %0 = vector.load %arg1[%c0, %c0_0, %c0_1, %c0_2] : memref<8x1x1x16xbf16, #tpu.memory_space<vmem>>, vector<8x1x1x16xbf16>
    %1 = vector.shape_cast %0 : vector<8x1x1x16xbf16> to vector<8x1x16xbf16>
    %2 = vector.shape_cast %1 : vector<8x1x16xbf16> to vector<8x16xbf16>
    %c0_3 = arith.constant 0 : index
    %c0_4 = arith.constant 0 : index
    %3 = vector.load %arg5[%c0_3, %c0_4] : memref<16x128xbf16, #tpu.memory_space<vmem>>, vector<16x128xbf16>
    %cst = arith.constant dense<0.000000e+00> : vector<8x128xf32>
    %4 = tpu.matmul %2, %3, %cst {dimension_numbers = #tpu.dot_dimension_numbers<[1], [0], [0], [1], [0, 0, 1, 1], [], []>} : vector<8x16xbf16>, vector<16x128xbf16>, vector<8x128xf32> -> vector<8x128xf32>
    %c0_5 = arith.constant 0 : index
    %c0_6 = arith.constant 0 : index
    %5 = vector.load %arg7[%c0_5, %c0_6] : memref<1x128xf32, #tpu.memory_space<vmem>>, vector<1x128xf32>
    %6 = vector.broadcast %5 : vector<1x128xf32> to vector<8x128xf32>
    %7 = arith.addf %4, %6 : vector<8x128xf32>
    %c0_7 = arith.constant 0 : index
    %c0_8 = arith.constant 0 : index
    %8 = vector.load %arg6[%c0_7, %c0_8] : memref<32x128xbf16, #tpu.memory_space<vmem>>, vector<32x128xbf16>
    %c0_9 = arith.constant 0 : index
    %c0_10 = arith.constant 0 : index
    %c0_11 = arith.constant 0 : index
    %9 = vector.load %arg3[%c0_9, %c0_10, %c0_11] : memref<1x1x32xf32, #tpu.memory_space<vmem>>, vector<1x1x32xf32>
    %10 = vector.shape_cast %9 : vector<1x1x32xf32> to vector<1x32xf32>
    %c0_12 = arith.constant 0 : index
    %c0_13 = arith.constant 0 : index
    %c0_14 = arith.constant 0 : index
    %11 = vector.load %arg4[%c0_12, %c0_13, %c0_14] : memref<1x1x32xf32, #tpu.memory_space<vmem>>, vector<1x1x32xf32>
    %12 = vector.shape_cast %11 : vector<1x1x32xf32> to vector<1x32xf32>
    %13 = vector.extract_strided_slice %7 {offsets = [0, 0], sizes = [1, 128], strides = [1, 1]} : vector<8x128xf32> to vector<1x128xf32>
    %14 = arith.truncf %10 : vector<1x32xf32> to vector<1x32xbf16>
    %cst_15 = arith.constant dense<0.000000e+00> : vector<1x128xf32>
    %15 = tpu.matmul %14, %8, %cst_15 {dimension_numbers = #tpu.dot_dimension_numbers<[1], [0], [0], [1], [0, 0, 1, 1], [], []>} : vector<1x32xbf16>, vector<32x128xbf16>, vector<1x128xf32> -> vector<1x128xf32>
    %16 = arith.addf %13, %15 : vector<1x128xf32>
    %17 = arith.negf %16 : vector<1x128xf32>
    %18 = math.exp %17 : vector<1x128xf32>
    %cst_16 = arith.constant 1.000000e+00 : f32
    %19 = vector.broadcast %cst_16 : f32 to vector<1x128xf32>
    %20 = arith.addf %19, %18 : vector<1x128xf32>
    %21 = arith.divf %19, %20 : vector<1x128xf32>
    %22 = vector.extract_strided_slice %16 {offsets = [0, 64], sizes = [1, 32], strides = [1, 1]} : vector<1x128xf32> to vector<1x32xf32>
    %23 = math.tanh %22 : vector<1x32xf32>
    %24 = vector.extract_strided_slice %21 {offsets = [0, 32], sizes = [1, 32], strides = [1, 1]} : vector<1x128xf32> to vector<1x32xf32>
    %25 = arith.mulf %24, %12 : vector<1x32xf32>
    %26 = vector.extract_strided_slice %21 {offsets = [0, 0], sizes = [1, 32], strides = [1, 1]} : vector<1x128xf32> to vector<1x32xf32>
    %27 = arith.mulf %26, %23 : vector<1x32xf32>
    %28 = arith.addf %25, %27 : vector<1x32xf32>
    %29 = vector.extract_strided_slice %21 {offsets = [0, 96], sizes = [1, 32], strides = [1, 1]} : vector<1x128xf32> to vector<1x32xf32>
    %30 = math.tanh %28 : vector<1x32xf32>
    %31 = arith.mulf %29, %30 : vector<1x32xf32>
    %32 = vector.extract_strided_slice %7 {offsets = [1, 0], sizes = [1, 128], strides = [1, 1]} : vector<8x128xf32> to vector<1x128xf32>
    %33 = arith.truncf %31 : vector<1x32xf32> to vector<1x32xbf16>
    %cst_17 = arith.constant dense<0.000000e+00> : vector<1x128xf32>
    %34 = tpu.matmul %33, %8, %cst_17 {dimension_numbers = #tpu.dot_dimension_numbers<[1], [0], [0], [1], [0, 0, 1, 1], [], []>} : vector<1x32xbf16>, vector<32x128xbf16>, vector<1x128xf32> -> vector<1x128xf32>
    %35 = arith.addf %32, %34 : vector<1x128xf32>
    %36 = arith.negf %35 : vector<1x128xf32>
    %37 = math.exp %36 : vector<1x128xf32>
    %cst_18 = arith.constant 1.000000e+00 : f32
    %38 = vector.broadcast %cst_18 : f32 to vector<1x128xf32>
    %39 = arith.addf %38, %37 : vector<1x128xf32>
    %40 = arith.divf %38, %39 : vector<1x128xf32>
    %41 = vector.extract_strided_slice %35 {offsets = [0, 64], sizes = [1, 32], strides = [1, 1]} : vector<1x128xf32> to vector<1x32xf32>
    %42 = math.tanh %41 : vector<1x32xf32>
    %43 = vector.extract_strided_slice %40 {offsets = [0, 32], sizes = [1, 32], strides = [1, 1]} : vector<1x128xf32> to vector<1x32xf32>
    %44 = arith.mulf %43, %28 : vector<1x32xf32>
    %45 = vector.extract_strided_slice %40 {offsets = [0, 0], sizes = [1, 32], strides = [1, 1]} : vector<1x128xf32> to vector<1x32xf32>
    %46 = arith.mulf %45, %42 : vector<1x32xf32>
    %47 = arith.addf %44, %46 : vector<1x32xf32>
    %48 = vector.extract_strided_slice %40 {offsets = [0, 96], sizes = [1, 32], strides = [1, 1]} : vector<1x128xf32> to vector<1x32xf32>
    %49 = math.tanh %47 : vector<1x32xf32>
    %50 = arith.mulf %48, %49 : vector<1x32xf32>
    %51 = vector.extract_strided_slice %7 {offsets = [2, 0], sizes = [1, 128], strides = [1, 1]} : vector<8x128xf32> to vector<1x128xf32>
    %52 = arith.truncf %50 : vector<1x32xf32> to vector<1x32xbf16>
    %cst_19 = arith.constant dense<0.000000e+00> : vector<1x128xf32>
    %53 = tpu.matmul %52, %8, %cst_19 {dimension_numbers = #tpu.dot_dimension_numbers<[1], [0], [0], [1], [0, 0, 1, 1], [], []>} : vector<1x32xbf16>, vector<32x128xbf16>, vector<1x128xf32> -> vector<1x128xf32>
    %54 = arith.addf %51, %53 : vector<1x128xf32>
    %55 = arith.negf %54 : vector<1x128xf32>
    %56 = math.exp %55 : vector<1x128xf32>
    %cst_20 = arith.constant 1.000000e+00 : f32
    %57 = vector.broadcast %cst_20 : f32 to vector<1x128xf32>
    %58 = arith.addf %57, %56 : vector<1x128xf32>
    %59 = arith.divf %57, %58 : vector<1x128xf32>
    %60 = vector.extract_strided_slice %54 {offsets = [0, 64], sizes = [1, 32], strides = [1, 1]} : vector<1x128xf32> to vector<1x32xf32>
    %61 = math.tanh %60 : vector<1x32xf32>
    %62 = vector.extract_strided_slice %59 {offsets = [0, 32], sizes = [1, 32], strides = [1, 1]} : vector<1x128xf32> to vector<1x32xf32>
    %63 = arith.mulf %62, %47 : vector<1x32xf32>
    %64 = vector.extract_strided_slice %59 {offsets = [0, 0], sizes = [1, 32], strides = [1, 1]} : vector<1x128xf32> to vector<1x32xf32>
    %65 = arith.mulf %64, %61 : vector<1x32xf32>
    %66 = arith.addf %63, %65 : vector<1x32xf32>
    %67 = vector.extract_strided_slice %59 {offsets = [0, 96], sizes = [1, 32], strides = [1, 1]} : vector<1x128xf32> to vector<1x32xf32>
    %68 = math.tanh %66 : vector<1x32xf32>
    %69 = arith.mulf %67, %68 : vector<1x32xf32>
    %70 = vector.extract_strided_slice %7 {offsets = [3, 0], sizes = [1, 128], strides = [1, 1]} : vector<8x128xf32> to vector<1x128xf32>
    %71 = arith.truncf %69 : vector<1x32xf32> to vector<1x32xbf16>
    %cst_21 = arith.constant dense<0.000000e+00> : vector<1x128xf32>
    %72 = tpu.matmul %71, %8, %cst_21 {dimension_numbers = #tpu.dot_dimension_numbers<[1], [0], [0], [1], [0, 0, 1, 1], [], []>} : vector<1x32xbf16>, vector<32x128xbf16>, vector<1x128xf32> -> vector<1x128xf32>
    %73 = arith.addf %70, %72 : vector<1x128xf32>
    %74 = arith.negf %73 : vector<1x128xf32>
    %75 = math.exp %74 : vector<1x128xf32>
    %cst_22 = arith.constant 1.000000e+00 : f32
    %76 = vector.broadcast %cst_22 : f32 to vector<1x128xf32>
    %77 = arith.addf %76, %75 : vector<1x128xf32>
    %78 = arith.divf %76, %77 : vector<1x128xf32>
    %79 = vector.extract_strided_slice %73 {offsets = [0, 64], sizes = [1, 32], strides = [1, 1]} : vector<1x128xf32> to vector<1x32xf32>
    %80 = math.tanh %79 : vector<1x32xf32>
    %81 = vector.extract_strided_slice %78 {offsets = [0, 32], sizes = [1, 32], strides = [1, 1]} : vector<1x128xf32> to vector<1x32xf32>
    %82 = arith.mulf %81, %66 : vector<1x32xf32>
    %83 = vector.extract_strided_slice %78 {offsets = [0, 0], sizes = [1, 32], strides = [1, 1]} : vector<1x128xf32> to vector<1x32xf32>
    %84 = arith.mulf %83, %80 : vector<1x32xf32>
    %85 = arith.addf %82, %84 : vector<1x32xf32>
    %86 = vector.extract_strided_slice %78 {offsets = [0, 96], sizes = [1, 32], strides = [1, 1]} : vector<1x128xf32> to vector<1x32xf32>
    %87 = math.tanh %85 : vector<1x32xf32>
    %88 = arith.mulf %86, %87 : vector<1x32xf32>
    %89 = vector.extract_strided_slice %7 {offsets = [4, 0], sizes = [1, 128], strides = [1, 1]} : vector<8x128xf32> to vector<1x128xf32>
    %90 = arith.truncf %88 : vector<1x32xf32> to vector<1x32xbf16>
    %cst_23 = arith.constant dense<0.000000e+00> : vector<1x128xf32>
    %91 = tpu.matmul %90, %8, %cst_23 {dimension_numbers = #tpu.dot_dimension_numbers<[1], [0], [0], [1], [0, 0, 1, 1], [], []>} : vector<1x32xbf16>, vector<32x128xbf16>, vector<1x128xf32> -> vector<1x128xf32>
    %92 = arith.addf %89, %91 : vector<1x128xf32>
    %93 = arith.negf %92 : vector<1x128xf32>
    %94 = math.exp %93 : vector<1x128xf32>
    %cst_24 = arith.constant 1.000000e+00 : f32
    %95 = vector.broadcast %cst_24 : f32 to vector<1x128xf32>
    %96 = arith.addf %95, %94 : vector<1x128xf32>
    %97 = arith.divf %95, %96 : vector<1x128xf32>
    %98 = vector.extract_strided_slice %92 {offsets = [0, 64], sizes = [1, 32], strides = [1, 1]} : vector<1x128xf32> to vector<1x32xf32>
    %99 = math.tanh %98 : vector<1x32xf32>
    %100 = vector.extract_strided_slice %97 {offsets = [0, 32], sizes = [1, 32], strides = [1, 1]} : vector<1x128xf32> to vector<1x32xf32>
    %101 = arith.mulf %100, %85 : vector<1x32xf32>
    %102 = vector.extract_strided_slice %97 {offsets = [0, 0], sizes = [1, 32], strides = [1, 1]} : vector<1x128xf32> to vector<1x32xf32>
    %103 = arith.mulf %102, %99 : vector<1x32xf32>
    %104 = arith.addf %101, %103 : vector<1x32xf32>
    %105 = vector.extract_strided_slice %97 {offsets = [0, 96], sizes = [1, 32], strides = [1, 1]} : vector<1x128xf32> to vector<1x32xf32>
    %106 = math.tanh %104 : vector<1x32xf32>
    %107 = arith.mulf %105, %106 : vector<1x32xf32>
    %108 = vector.extract_strided_slice %7 {offsets = [5, 0], sizes = [1, 128], strides = [1, 1]} : vector<8x128xf32> to vector<1x128xf32>
    %109 = arith.truncf %107 : vector<1x32xf32> to vector<1x32xbf16>
    %cst_25 = arith.constant dense<0.000000e+00> : vector<1x128xf32>
    %110 = tpu.matmul %109, %8, %cst_25 {dimension_numbers = #tpu.dot_dimension_numbers<[1], [0], [0], [1], [0, 0, 1, 1], [], []>} : vector<1x32xbf16>, vector<32x128xbf16>, vector<1x128xf32> -> vector<1x128xf32>
    %111 = arith.addf %108, %110 : vector<1x128xf32>
    %112 = arith.negf %111 : vector<1x128xf32>
    %113 = math.exp %112 : vector<1x128xf32>
    %cst_26 = arith.constant 1.000000e+00 : f32
    %114 = vector.broadcast %cst_26 : f32 to vector<1x128xf32>
    %115 = arith.addf %114, %113 : vector<1x128xf32>
    %116 = arith.divf %114, %115 : vector<1x128xf32>
    %117 = vector.extract_strided_slice %111 {offsets = [0, 64], sizes = [1, 32], strides = [1, 1]} : vector<1x128xf32> to vector<1x32xf32>
    %118 = math.tanh %117 : vector<1x32xf32>
    %119 = vector.extract_strided_slice %116 {offsets = [0, 32], sizes = [1, 32], strides = [1, 1]} : vector<1x128xf32> to vector<1x32xf32>
    %120 = arith.mulf %119, %104 : vector<1x32xf32>
    %121 = vector.extract_strided_slice %116 {offsets = [0, 0], sizes = [1, 32], strides = [1, 1]} : vector<1x128xf32> to vector<1x32xf32>
    %122 = arith.mulf %121, %118 : vector<1x32xf32>
    %123 = arith.addf %120, %122 : vector<1x32xf32>
    %124 = vector.extract_strided_slice %116 {offsets = [0, 96], sizes = [1, 32], strides = [1, 1]} : vector<1x128xf32> to vector<1x32xf32>
    %125 = math.tanh %123 : vector<1x32xf32>
    %126 = arith.mulf %124, %125 : vector<1x32xf32>
    %127 = vector.extract_strided_slice %7 {offsets = [6, 0], sizes = [1, 128], strides = [1, 1]} : vector<8x128xf32> to vector<1x128xf32>
    %128 = arith.truncf %126 : vector<1x32xf32> to vector<1x32xbf16>
    %cst_27 = arith.constant dense<0.000000e+00> : vector<1x128xf32>
    %129 = tpu.matmul %128, %8, %cst_27 {dimension_numbers = #tpu.dot_dimension_numbers<[1], [0], [0], [1], [0, 0, 1, 1], [], []>} : vector<1x32xbf16>, vector<32x128xbf16>, vector<1x128xf32> -> vector<1x128xf32>
    %130 = arith.addf %127, %129 : vector<1x128xf32>
    %131 = arith.negf %130 : vector<1x128xf32>
    %132 = math.exp %131 : vector<1x128xf32>
    %cst_28 = arith.constant 1.000000e+00 : f32
    %133 = vector.broadcast %cst_28 : f32 to vector<1x128xf32>
    %134 = arith.addf %133, %132 : vector<1x128xf32>
    %135 = arith.divf %133, %134 : vector<1x128xf32>
    %136 = vector.extract_strided_slice %130 {offsets = [0, 64], sizes = [1, 32], strides = [1, 1]} : vector<1x128xf32> to vector<1x32xf32>
    %137 = math.tanh %136 : vector<1x32xf32>
    %138 = vector.extract_strided_slice %135 {offsets = [0, 32], sizes = [1, 32], strides = [1, 1]} : vector<1x128xf32> to vector<1x32xf32>
    %139 = arith.mulf %138, %123 : vector<1x32xf32>
    %140 = vector.extract_strided_slice %135 {offsets = [0, 0], sizes = [1, 32], strides = [1, 1]} : vector<1x128xf32> to vector<1x32xf32>
    %141 = arith.mulf %140, %137 : vector<1x32xf32>
    %142 = arith.addf %139, %141 : vector<1x32xf32>
    %143 = vector.extract_strided_slice %135 {offsets = [0, 96], sizes = [1, 32], strides = [1, 1]} : vector<1x128xf32> to vector<1x32xf32>
    %144 = math.tanh %142 : vector<1x32xf32>
    %145 = arith.mulf %143, %144 : vector<1x32xf32>
    %146 = vector.extract_strided_slice %7 {offsets = [7, 0], sizes = [1, 128], strides = [1, 1]} : vector<8x128xf32> to vector<1x128xf32>
    %147 = arith.truncf %145 : vector<1x32xf32> to vector<1x32xbf16>
    %cst_29 = arith.constant dense<0.000000e+00> : vector<1x128xf32>
    %148 = tpu.matmul %147, %8, %cst_29 {dimension_numbers = #tpu.dot_dimension_numbers<[1], [0], [0], [1], [0, 0, 1, 1], [], []>} : vector<1x32xbf16>, vector<32x128xbf16>, vector<1x128xf32> -> vector<1x128xf32>
    %149 = arith.addf %146, %148 : vector<1x128xf32>
    %150 = arith.negf %149 : vector<1x128xf32>
    %151 = math.exp %150 : vector<1x128xf32>
    %cst_30 = arith.constant 1.000000e+00 : f32
    %152 = vector.broadcast %cst_30 : f32 to vector<1x128xf32>
    %153 = arith.addf %152, %151 : vector<1x128xf32>
    %154 = arith.divf %152, %153 : vector<1x128xf32>
    %155 = vector.extract_strided_slice %149 {offsets = [0, 64], sizes = [1, 32], strides = [1, 1]} : vector<1x128xf32> to vector<1x32xf32>
    %156 = math.tanh %155 : vector<1x32xf32>
    %157 = vector.extract_strided_slice %154 {offsets = [0, 32], sizes = [1, 32], strides = [1, 1]} : vector<1x128xf32> to vector<1x32xf32>
    %158 = arith.mulf %157, %142 : vector<1x32xf32>
    %159 = vector.extract_strided_slice %154 {offsets = [0, 0], sizes = [1, 32], strides = [1, 1]} : vector<1x128xf32> to vector<1x32xf32>
    %160 = arith.mulf %159, %156 : vector<1x32xf32>
    %161 = arith.addf %158, %160 : vector<1x32xf32>
    %162 = vector.extract_strided_slice %154 {offsets = [0, 96], sizes = [1, 32], strides = [1, 1]} : vector<1x128xf32> to vector<1x32xf32>
    %163 = math.tanh %161 : vector<1x32xf32>
    %164 = arith.mulf %162, %163 : vector<1x32xf32>
    %c0_31 = arith.constant 0 : index
    %c0_32 = arith.constant 0 : index
    %c0_33 = arith.constant 0 : index
    %165 = vector.load %arg12[%c0_31, %c0_32, %c0_33] : memref<1x1x32xf32, #tpu.memory_space<vmem>>, vector<1x1x32xf32>
    %166 = vector.shape_cast %165 : vector<1x1x32xf32> to vector<1x32xf32>
    %167 = vector.shape_cast %164 : vector<1x32xf32> to vector<1x1x32xf32>
    tpu.vector_store %arg12[%c0_31, %c0_32, %c0_33], %167 {strides = array<i32>} : memref<1x1x32xf32, #tpu.memory_space<vmem>>, vector<1x1x32xf32>,
    %c0_34 = arith.constant 0 : index
    %c0_35 = arith.constant 0 : index
    %c0_36 = arith.constant 0 : index
    %168 = vector.load %arg13[%c0_34, %c0_35, %c0_36] : memref<1x1x32xf32, #tpu.memory_space<vmem>>, vector<1x1x32xf32>
    %169 = vector.shape_cast %168 : vector<1x1x32xf32> to vector<1x32xf32>
    %170 = vector.shape_cast %161 : vector<1x32xf32> to vector<1x1x32xf32>
    tpu.vector_store %arg13[%c0_34, %c0_35, %c0_36], %170 {strides = array<i32>} : memref<1x1x32xf32, #tpu.memory_space<vmem>>, vector<1x1x32xf32>,
    %171 = vector.shape_cast %31 : vector<1x32xf32> to vector<1x1x32xf32>
    %172 = vector.shape_cast %50 : vector<1x32xf32> to vector<1x1x32xf32>
    %173 = vector.shape_cast %69 : vector<1x32xf32> to vector<1x1x32xf32>
    %174 = vector.shape_cast %88 : vector<1x32xf32> to vector<1x1x32xf32>
    %175 = vector.shape_cast %107 : vector<1x32xf32> to vector<1x1x32xf32>
    %176 = vector.shape_cast %126 : vector<1x32xf32> to vector<1x1x32xf32>
    %177 = vector.shape_cast %145 : vector<1x32xf32> to vector<1x1x32xf32>
    %178 = vector.shape_cast %164 : vector<1x32xf32> to vector<1x1x32xf32>
    %179 = tpu.concatenate %171, %172, %173, %174, %175, %176, %177, %178 in 0 : vector<1x1x32xf32>, vector<1x1x32xf32>, vector<1x1x32xf32>, vector<1x1x32xf32>, vector<1x1x32xf32>, vector<1x1x32xf32>, vector<1x1x32xf32>, vector<1x1x32xf32> -> vector<8x1x32xf32>
    %180 = arith.truncf %179 : vector<8x1x32xf32> to vector<8x1x32xbf16>
    %c0_37 = arith.constant 0 : index
    %c0_38 = arith.constant 0 : index
    %c0_39 = arith.constant 0 : index
    %c0_40 = arith.constant 0 : index
    %181 = vector.load %arg2[%c0_37, %c0_38, %c0_39, %c0_40] : memref<16x1x1x32xbf16, #tpu.memory_space<vmem>>, vector<16x1x1x32xbf16>
    %182 = vector.shape_cast %181 : vector<16x1x1x32xbf16> to vector<16x1x32xbf16>
    %c0_41 = arith.constant 0 : index
    %c0_42 = arith.constant 0 : index
    %183 = vector.load %arg8[%c0_41, %c0_42] : memref<32x32xbf16, #tpu.memory_space<vmem>>, vector<32x32xbf16>
    %c0_43 = arith.constant 0 : index
    %c0_44 = arith.constant 0 : index
    %184 = vector.load %arg9[%c0_43, %c0_44] : memref<32x32xbf16, #tpu.memory_space<vmem>>, vector<32x32xbf16>
    %185 = vector.shape_cast %180 : vector<8x1x32xbf16> to vector<8x32xbf16>
    %186 = vector.shape_cast %182 : vector<16x1x32xbf16> to vector<16x32xbf16>
    %cst_45 = arith.constant dense<0.000000e+00> : vector<8x16xf32>
    %187 = tpu.matmul %185, %186, %cst_45 {dimension_numbers = #tpu.dot_dimension_numbers<[1], [1], [0], [0], [0, 0, 1, 0], [], []>} : vector<8x32xbf16>, vector<16x32xbf16>, vector<8x16xf32> -> vector<8x16xf32>
    %cst_46 = arith.constant dense<0xFF800000> : vector<8xf32>
    %188 = vector.multi_reduction <maximumf>, %187, %cst_46 [1] : vector<8x16xf32> to vector<8xf32>
    %189 = vector.shape_cast %188 : vector<8xf32> to vector<8x1xf32>
    %190 = vector.broadcast %189 : vector<8x1xf32> to vector<8x16xf32>
    %191 = arith.subf %187, %190 : vector<8x16xf32>
    %192 = math.exp %191 : vector<8x16xf32>
    %cst_47 = arith.constant dense<0.000000e+00> : vector<8xf32>
    %193 = vector.multi_reduction <add>, %192, %cst_47 [1] : vector<8x16xf32> to vector<8xf32>
    %194 = vector.shape_cast %193 : vector<8xf32> to vector<8x1xf32>
    %195 = tpu.reciprocal %194 {approx = true} : vector<8x1xf32> -> vector<8x1xf32>
    %196 = vector.broadcast %195 : vector<8x1xf32> to vector<8x16xf32>
    %197 = arith.mulf %192, %196 : vector<8x16xf32>
    %198 = arith.truncf %197 : vector<8x16xf32> to vector<8x16xbf16>
    %cst_48 = arith.constant dense<0.000000e+00> : vector<8x32xf32>
    %199 = tpu.matmul %198, %186, %cst_48 {dimension_numbers = #tpu.dot_dimension_numbers<[1], [0], [0], [1], [0, 0, 1, 1], [], []>} : vector<8x16xbf16>, vector<16x32xbf16>, vector<8x32xf32> -> vector<8x32xf32>
    %200 = arith.truncf %199 : vector<8x32xf32> to vector<8x32xbf16>
    %cst_49 = arith.constant dense<0.000000e+00> : vector<8x32xf32>
    %201 = tpu.matmul %200, %183, %cst_49 {dimension_numbers = #tpu.dot_dimension_numbers<[1], [0], [0], [1], [0, 0, 1, 1], [], []>} : vector<8x32xbf16>, vector<32x32xbf16>, vector<8x32xf32> -> vector<8x32xf32>
    %cst_50 = arith.constant dense<0.000000e+00> : vector<8x32xf32>
    %202 = tpu.matmul %185, %184, %cst_50 {dimension_numbers = #tpu.dot_dimension_numbers<[1], [0], [0], [1], [0, 0, 1, 1], [], []>} : vector<8x32xbf16>, vector<32x32xbf16>, vector<8x32xf32> -> vector<8x32xf32>
    %203 = arith.addf %201, %202 : vector<8x32xf32>
    %204 = math.tanh %203 : vector<8x32xf32>
    %205 = vector.shape_cast %204 : vector<8x32xf32> to vector<8x1x32xf32>
    %c0_51 = arith.constant 0 : index
    %c0_52 = arith.constant 0 : index
    %c0_53 = arith.constant 0 : index
    %c0_54 = arith.constant 0 : index
    %206 = vector.load %arg10[%c0_51, %c0_52, %c0_53, %c0_54] : memref<8x1x1x32xf32, #tpu.memory_space<vmem>>, vector<8x1x1x32xf32>
    %207 = vector.shape_cast %206 : vector<8x1x1x32xf32> to vector<8x1x32xf32>
    %208 = vector.shape_cast %205 : vector<8x1x32xf32> to vector<8x1x1x32xf32>
    tpu.vector_store %arg10[%c0_51, %c0_52, %c0_53, %c0_54], %208 {strides = array<i32>} : memref<8x1x1x32xf32, #tpu.memory_space<vmem>>, vector<8x1x1x32xf32>,
    %209 = vector.shape_cast %197 : vector<8x16xf32> to vector<8x1x16xf32>
    %c0_55 = arith.constant 0 : index
    %c0_56 = arith.constant 0 : index
    %c0_57 = arith.constant 0 : index
    %c0_58 = arith.constant 0 : index
    %210 = vector.load %arg11[%c0_55, %c0_56, %c0_57, %c0_58] : memref<8x1x1x16xf32, #tpu.memory_space<vmem>>, vector<8x1x1x16xf32>
    %211 = vector.shape_cast %210 : vector<8x1x1x16xf32> to vector<8x1x16xf32>
    %212 = vector.shape_cast %209 : vector<8x1x16xf32> to vector<8x1x1x16xf32>
    tpu.vector_store %arg11[%c0_55, %c0_56, %c0_57, %c0_58], %212 {strides = array<i32>} : memref<8x1x1x16xf32, #tpu.memory_space<vmem>>, vector<8x1x1x16xf32>,
    return
  }
  func.func @transform_0(%arg0: i32) -> (i32, i32, i32, i32) {
    %c0_i32 = arith.constant 0 : i32
    %c0_i32_0 = arith.constant 0 : i32
    %c0_i32_1 = arith.constant 0 : i32
    %c0_i32_2 = arith.constant 0 : i32
    return %c0_i32, %arg0, %c0_i32_0, %c0_i32_1 : i32, i32, i32, i32
  }
  func.func @transform_1(%arg0: i32) -> (i32, i32, i32, i32) {
    %c0_i32 = arith.constant 0 : i32
    %c0_i32_0 = arith.constant 0 : i32
    %c0_i32_1 = arith.constant 0 : i32
    %c0_i32_2 = arith.constant 0 : i32
    return %c0_i32, %arg0, %c0_i32_0, %c0_i32_1 : i32, i32, i32, i32
  }
  func.func @transform_2(%arg0: i32) -> (i32, i32, i32) {
    %c0_i32 = arith.constant 0 : i32
    %c0_i32_0 = arith.constant 0 : i32
    %c0_i32_1 = arith.constant 0 : i32
    return %arg0, %c0_i32, %c0_i32_0 : i32, i32, i32
  }
  func.func @transform_3(%arg0: i32) -> (i32, i32, i32) {
    %c0_i32 = arith.constant 0 : i32
    %c0_i32_0 = arith.constant 0 : i32
    %c0_i32_1 = arith.constant 0 : i32
    return %arg0, %c0_i32, %c0_i32_0 : i32, i32, i32
  }
  func.func @transform_4(%arg0: i32) -> (i32, i32) {
    %c0_i32 = arith.constant 0 : i32
    %c0_i32_0 = arith.constant 0 : i32
    %c0_i32_1 = arith.constant 0 : i32
    return %c0_i32, %c0_i32_0 : i32, i32
  }
  func.func @transform_5(%arg0: i32) -> (i32, i32) {
    %c0_i32 = arith.constant 0 : i32
    %c0_i32_0 = arith.constant 0 : i32
    %c0_i32_1 = arith.constant 0 : i32
    return %c0_i32, %c0_i32_0 : i32, i32
  }
  func.func @transform_6(%arg0: i32) -> (i32, i32) {
    %c0_i32 = arith.constant 0 : i32
    %c0_i32_0 = arith.constant 0 : i32
    %c0_i32_1 = arith.constant 0 : i32
    return %c0_i32, %c0_i32_0 : i32, i32
  }
  func.func @transform_7(%arg0: i32) -> (i32, i32) {
    %c0_i32 = arith.constant 0 : i32
    %c0_i32_0 = arith.constant 0 : i32
    %c0_i32_1 = arith.constant 0 : i32
    return %c0_i32, %c0_i32_0 : i32, i32
  }
  func.func @transform_8(%arg0: i32) -> (i32, i32) {
    %c0_i32 = arith.constant 0 : i32
    %c0_i32_0 = arith.constant 0 : i32
    %c0_i32_1 = arith.constant 0 : i32
    return %c0_i32, %c0_i32_0 : i32, i32
  }
  func.func @transform_9(%arg0: i32) -> (i32, i32, i32, i32) {
    %c0_i32 = arith.constant 0 : i32
    %c0_i32_0 = arith.constant 0 : i32
    %c0_i32_1 = arith.constant 0 : i32
    %c0_i32_2 = arith.constant 0 : i32
    return %c0_i32, %arg0, %c0_i32_0, %c0_i32_1 : i32, i32, i32, i32
  }
  func.func @transform_10(%arg0: i32) -> (i32, i32, i32, i32) {
    %c0_i32 = arith.constant 0 : i32
    %c0_i32_0 = arith.constant 0 : i32
    %c0_i32_1 = arith.constant 0 : i32
    %c0_i32_2 = arith.constant 0 : i32
    return %c0_i32, %arg0, %c0_i32_0, %c0_i32_1 : i32, i32, i32, i32
  }
  func.func @transform_11(%arg0: i32) -> (i32, i32, i32) {
    %c0_i32 = arith.constant 0 : i32
    %c0_i32_0 = arith.constant 0 : i32
    %c0_i32_1 = arith.constant 0 : i32
    return %arg0, %c0_i32, %c0_i32_0 : i32, i32, i32
  }
  func.func @transform_12(%arg0: i32) -> (i32, i32, i32) {
    %c0_i32 = arith.constant 0 : i32
    %c0_i32_0 = arith.constant 0 : i32
    %c0_i32_1 = arith.constant 0 : i32
    return %arg0, %c0_i32, %c0_i32_0 : i32, i32, i32
  }
}

</mosaic_0001>

<bundles_post_ra>
// kernel: forward.1
= control target key start
LH: loop header
LB: loop body
LE: loop exit
PB: predicated region body
PF: predicated region fallthrough
CT: control target
= control target key end

     0   :  { %s3597_s0 = inlined_call_operand.vmem [shape: bf16[8,2,1,16], index: 0, kind: input, shape index: {}]   ;;  %s3598_s1 = inlined_call_operand.vmem [shape: bf16[16,2,1,32], index: 1, kind: input, shape index: {}]   ;;  %s3599_s2 = inlined_call_operand.vmem [shape: f32[2,1,32], index: 2, kind: input, shape index: {}]   ;;  %s3600_s3 = inlined_call_operand.vmem [shape: f32[2,1,32], index: 3, kind: input, shape index: {}]   ;;  %s3601_s4 = inlined_call_operand.vmem [shape: bf16[16,128], index: 4, kind: input, shape index: {}]   ;;  %s3602_s5 = inlined_call_operand.vmem [shape: bf16[32,128], index: 5, kind: input, shape index: {}]   ;;  %s3603_s6 = inlined_call_operand.vmem [shape: f32[1,128], index: 6, kind: input, shape index: {}]   ;;  %s3604_s7 = inlined_call_operand.vmem [shape: bf16[32,32], index: 7, kind: input, shape index: {}]   ;;  %s3605_s8 = inlined_call_operand.vmem [shape: bf16[32,32], index: 8, kind: input, shape index: {}]   ;;  %s3606_s9 = inlined_call_operand.hbm [shape: f32[8,2,1,32], index: 9, kind: output, shape index: {0}]   ;;  %s3607_s10 = inlined_call_operand.hbm [shape: f32[8,2,1,16], index: 10, kind: output, shape index: {1}]   ;;  %s3608_s11 = inlined_call_operand.hbm [shape: f32[2,1,32], index: 11, kind: output, shape index: {2}]   ;;  %s3609_s12 = inlined_call_operand.hbm [shape: f32[2,1,32], index: 12, kind: output, shape index: {3}]  }
   0x1   :  { %3616 = sst [smem:[#allocation14_spill]] %s3597_s0 }
   0x2   :  { %3617 = sst [smem:[#allocation15_spill]] %s3598_s1 }
   0x3   :  { %3618 = sst [smem:[#allocation16_spill]] %s3599_s2 }
   0x4   :  { %3619 = sst [smem:[#allocation17_spill]] %s3600_s3 }
   0x5   :  { %3620 = sst [smem:[#allocation18_spill]] %s3601_s4 }
   0x6   :  { %3621 = sst [smem:[#allocation19_spill]] %s3602_s5 }
   0x7   :  { %3622 = sst [smem:[#allocation20_spill]] %s3603_s6 }
   0x8   :  { %3623 = sst [smem:[#allocation21_spill]] %s3604_s7 }
   0x9   :  { %18 = vsyncpa [#allocation5], 0 }
   0xa   :  { %20 = vsyncpa [#allocation5 + $0x1], 0 }
   0xb   :  { %21 = vsyncpa [#allocation7], 0 }
   0xc   :  { %23 = vsyncpa [#allocation7 + $0x1], 0 }
   0xd   :  { %24 = vsyncpa [#allocation10], 0 }
   0xe   :  { %26 = vsyncpa [#allocation10 + $0x1], 0  ;;  %s3077_s21 = smov 0   ;;  %s3079_s22 = smov 0  }
   0xf   :  { %s3081_s23 = smov 0   ;;  %s3083_s24 = smov 0  }
  0x10 LB: > { %s3098_s25 = sadd.s32 4294967295, %s2998_s24   ;;  %s3610_s26 = sadd.s32 4294967294, %s2998_s24   ;;  %s2998_s24 = sphi %s3083_s24, %s3643_s24   ;;  %s2994_s23 = sphi %s3081_s23, %s3642_s23   ;;  %s2990_s22 = sphi %s3079_s22, %s3641_s22   ;;  %s2986_s21 = sphi %s3077_s21, %s3640_s21  }
  0x11   : > { %s3102_s27 = sadd.s32 1, %s2998_s24   ;;  %s39_s28 = sadd.s32 1, %s2994_s23 }
  0x12   : > { %s36_s29 = ssub.s32 %s2998_s24, %s3102_s27  ;;  %p46_p0 = scmp.ne.s32.totalorder %s2994_s23, %s2990_s22 }
  0x13   : > { %p37_p1 = scmp.eq.s32.totalorder %s36_s29, 0  ;;  %p47_p2 = scmp.eq.s32.totalorder %s2998_s24, 0 }
  0x14   : > { %p259_p3 = scmp.eq.s32.totalorder %s3098_s25, 1  ;;  %p264_p4 = scmp.ne.s32.totalorder %s2990_s22, %s2986_s21 }
  0x15   : > { %s3114_s30 = scalar_select %p37_p1, %s2994_s23, %s39_s28  }
  0x16   : > { %p3116_p5 = por %p47_p2, %p46_p0  ;;  %p3120_p6 = por %p259_p3, %p46_p0 }
  0x17   : > { %p265_p7 = scmp.eq.s32.totalorder %s3610_s26, 1  ;;  %p3615_p9 = scmp.ge.s32.totalorder %s2998_s24, 2 }
  0x19   : > { %p3126_p8 = por %p265_p7, %p264_p4  ;;  %374 = sbr.rel (%p3615_p9) target bundleno = 63 (0x3f), region = 36 }
  0x1e   : > { %377 = sbr.rel (!%p3116_p5) target bundleno = 44 (0x2c), region = 40  ;;  %s379_s16 = sand.u32 (%p3116_p5), 1, %s2994_s23  }
  0x1f   : > { %s3627_s0 = sld [smem:[#allocation14_spill]] (%p3116_p5)  ;;  %s2510_s20 = sshll.u32 (%p3116_p5), %s379_s16, 3 }
  0x20   : > { %s381_s28 = scalar_lea.vmem (%p3116_p5), [#allocation2], %s2510_s20 }
  0x25   : > { %s382_s19 = scalar_lea.vmem %s3627_s0, %s2998_s24 }
  0x26   : > { %v399_v0 = vld [vmem:[%s382_s19] sm:$0x1]  ;;  %v401_v1 = vld [vmem:[%s382_s19 + $0x2] sm:$0x1]  ;;  %v403_v2 = vld [vmem:[%s382_s19 + $0x4] sm:$0x1] }
  0x27   : > { %v405_v3 = vld [vmem:[%s382_s19 + $0x6] sm:$0x1]  ;;  %400 = vst [vmem:[%s381_s28] sm:$0x1] %v399_v0  ;;  %402 = vst [vmem:[%s381_s28 + $0x1] sm:$0x1] %v401_v1 }
  0x28   : > { %404 = vst [vmem:[%s381_s28 + $0x2] sm:$0x1] %v403_v2  ;;  %406 = vst [vmem:[%s381_s28 + $0x3] sm:$0x1] %v405_v3  ;;  %v407_v4 = vld [vmem:[%s382_s19 + $0x8] sm:$0x1] }
  0x29   : > { %v409_v5 = vld [vmem:[%s382_s19 + $0xa] sm:$0x1]  ;;  %v411_v6 = vld [vmem:[%s382_s19 + $0xc] sm:$0x1]  ;;  %408 = vst [vmem:[%s381_s28 + $0x4] sm:$0x1] %v407_v4 }
  0x2a   : > { %410 = vst [vmem:[%s381_s28 + $0x5] sm:$0x1] %v409_v5  ;;  %412 = vst [vmem:[%s381_s28 + $0x6] sm:$0x1] %v411_v6  ;;  %v413_v7 = vld [vmem:[%s382_s19 + $0xe] sm:$0x1] }
  0x2b   : > { %414 = vst [vmem:[%s381_s28 + $0x7] sm:$0x1] %v413_v7 }
  0x2c PF: > { %454 = sbr.rel (!%p3116_p5) target bundleno = 63 (0x3f), region = 81  ;;  %s456_s29 = sand.u32 (%p3116_p5), 1, %s2994_s23  }
  0x2d   : > { %s3628_s1 = sld [smem:[#allocation15_spill]] (%p3116_p5)  ;;  %s2511_s19 = sshll.u32 (%p3116_p5), %s456_s29, 4 }
  0x2e   : > { %s458_s13 = scalar_lea.vmem (%p3116_p5), [#allocation3], %s2511_s19 }
  0x33   : > { %s3147_s18 = scalar_lea.vmem %s3628_s1, %s2998_s24 }
  0x34   : > { %v476_v8 = vld [vmem:[%s3147_s18] sm:$0x1]  ;;  %v478_v9 = vld [vmem:[%s3147_s18 + $0x2] sm:$0x1]  ;;  %v480_v10 = vld [vmem:[%s3147_s18 + $0x4] sm:$0x1] }
  0x35   : > { %v482_v11 = vld [vmem:[%s3147_s18 + $0x6] sm:$0x1]  ;;  %477 = vst [vmem:[%s458_s13] sm:$0x1] %v476_v8  ;;  %479 = vst [vmem:[%s458_s13 + $0x1] sm:$0x1] %v478_v9 }
  0x36   : > { %481 = vst [vmem:[%s458_s13 + $0x2] sm:$0x1] %v480_v10  ;;  %483 = vst [vmem:[%s458_s13 + $0x3] sm:$0x1] %v482_v11  ;;  %v484_v12 = vld [vmem:[%s3147_s18 + $0x8] sm:$0x1] }
  0x37   : > { %v486_v13 = vld [vmem:[%s3147_s18 + $0xa] sm:$0x1]  ;;  %v488_v14 = vld [vmem:[%s3147_s18 + $0xc] sm:$0x1]  ;;  %485 = vst [vmem:[%s458_s13 + $0x4] sm:$0x1] %v484_v12 }
  0x38   : > { %487 = vst [vmem:[%s458_s13 + $0x5] sm:$0x1] %v486_v13  ;;  %489 = vst [vmem:[%s458_s13 + $0x6] sm:$0x1] %v488_v14  ;;  %v490_v15 = vld [vmem:[%s3147_s18 + $0xe] sm:$0x1] }
  0x39   : > { %v492_v16 = vld [vmem:[%s3147_s18 + $0x10] sm:$0x1]  ;;  %v494_v17 = vld [vmem:[%s3147_s18 + $0x12] sm:$0x1]  ;;  %491 = vst [vmem:[%s458_s13 + $0x7] sm:$0x1] %v490_v15 }
  0x3a   : > { %493 = vst [vmem:[%s458_s13 + $0x8] sm:$0x1] %v492_v16  ;;  %495 = vst [vmem:[%s458_s13 + $0x9] sm:$0x1] %v494_v17  ;;  %v496_v18 = vld [vmem:[%s3147_s18 + $0x14] sm:$0x1] }
  0x3b   : > { %v498_v19 = vld [vmem:[%s3147_s18 + $0x16] sm:$0x1]  ;;  %v500_v20 = vld [vmem:[%s3147_s18 + $0x18] sm:$0x1]  ;;  %497 = vst [vmem:[%s458_s13 + $0xa] sm:$0x1] %v496_v18 }
  0x3c   : > { %499 = vst [vmem:[%s458_s13 + $0xb] sm:$0x1] %v498_v19  ;;  %501 = vst [vmem:[%s458_s13 + $0xc] sm:$0x1] %v500_v20  ;;  %v502_v21 = vld [vmem:[%s3147_s18 + $0x1a] sm:$0x1] }
  0x3d   : > { %v504_v22 = vld [vmem:[%s3147_s18 + $0x1c] sm:$0x1]  ;;  %v506_v23 = vld [vmem:[%s3147_s18 + $0x1e] sm:$0x1]  ;;  %503 = vst [vmem:[%s458_s13 + $0xd] sm:$0x1] %v502_v21 }
  0x3e   : > { %505 = vst [vmem:[%s458_s13 + $0xe] sm:$0x1] %v504_v22  ;;  %507 = vst [vmem:[%s458_s13 + $0xf] sm:$0x1] %v506_v23 }
  0x3f PF: > { %p2512_p10 = scmp.ge.s32.totalorder %s2998_s24, 1  ;;  %p574_p11 = scmp.lt.s32.totalorder %s2998_s24, 3 }
  0x41   : > { %p575_p12 = pnand %p2512_p10, %p574_p11 }
  0x42   : > { %s3629_s5 = sld [smem:[#allocation19_spill]] (!%p575_p12)  ;;  %p652_p13 = scmp.lt.s32.totalorder (!%p575_p12), %s3098_s25, 1 }
  0x43   : > { %578 = sbr.rel (%p575_p12) target bundleno = 6599 (0x19c7), region = 130  ;;  %s3630_s4 = sld [smem:[#allocation18_spill]] (!%p575_p12) }
  0x44   : > { %s3190_s19 = sand.u32 (!%p575_p12), 1, %s2990_s22   ;;  %s3631_s2 = sld [smem:[#allocation16_spill]] (!%p575_p12) }
  0x45   : > { %s3196_s20 = sshll.u32 (!%p575_p12), %s3190_s19, 3  ;;  %s3632_s6 = sld [smem:[#allocation20_spill]] (!%p575_p12) }
  0x46   : > { %s583_s17 = scalar_lea.vmem (!%p575_p12), [#allocation2], %s3196_s20  ;;  %s3633_s3 = sld [smem:[#allocation17_spill]] (!%p575_p12) }
  0x47   : > { %s3003_s26 = smov (!%p575_p12), 64   ;;  %s3612_s18 = smov (!%p575_p12), 32  }
  0x48   : > { %v3170_v24 = vld [vmem:[%s3629_s5 + $0x8] sm:$0xff]   ;;  %v694_v25 = vlaneseq  ;;  %v3000_v26 = vmov 0.0   ;;  %v3178_v27 = vld [vmem:[%s3629_s5] sm:$0xff]   ;;  %vm3001_vm0 = vmmov 0   ;;  %s3193_s13 = scalar_select %p652_p13, %s3098_s25, 1  ;;  %vm895_vm1 = vcmask 261120  }
  0x49   : > { %2621 = vmatprep.subr.bf16.mxu1 %v3000_v26  ;;  %2615 = vmatprep.subr.bf16.mxu0 %v3000_v26  ;;  %v2777_v28 = vld [vmem:[%s3630_s4] sm:$0xff]   ;;  %v3002_v29 = vmov 1966171168   ;;  %vm805_vm2 = vcmask 1041409   ;;  %vm808_vm3 = vcmask 1042434   ;;  %vm811_vm4 = vcmask 1043459  }
  0x4a   : > { %2622 = vmatpush3.bf16.msra.mxu1 %v3170_v24  ;;  %2625 = vmatprep.mubr.msk.bf16.mxu1 %vm3001_vm0, %v3000_v26  ;;  %v692_v30 = vunpack.c.l.s4 %v3002_v29  ;;  %v695_v31 = vshrl.u32 %v694_v25, 7  ;;  %s654_s16 = scalar_lea.vmem %s3631_s2, %s3193_s13  ;;  %v2518_v35 = vld.sshfl [vmem:[%s583_s17] sm:$0x1 pattern:$0x75316420]  ;;  %vm814_vm5 = vcmask 1044484  }
  0x4b   : > { %2623 = vmatprep.subr.bf16.mxu1 %v3000_v26  ;;  %2617 = vmatprep.mubr.msk.bf16.mxu0 %vm3001_vm0, %v3000_v26  ;;  %v880_v33 = vld [vmem:[%s654_s16] sm:$0x1]  ;;  %v2519_v37 = vld.sshfl [vmem:[%s583_s17 + $0x1] sm:$0x1 pattern:$0x75316420] }
  0x4c   : > { %2616 = vmatpush3.bf16.msra.mxu0 %v2777_v28  ;;  %v693_v32 = vunpack.c.0.s8 %v692_v30  ;;  %v882_v34 = vpack.c.bf16 %v880_v33, %v880_v33  ;;  %v2520_v38 = vld.sshfl [vmem:[%s583_s17 + $0x2] sm:$0x1 pattern:$0x75316420]  ;;  %vm817_vm6 = vcmask 1045509   ;;  %vm820_vm7 = vcmask 1046534  }
  0x4d   : > { %2629 = vmatprep.subr.bf16.mxu0 %v3000_v26  ;;  %v2521_v41 = vld.sshfl [vmem:[%s583_s17 + $0x3] sm:$0x1 pattern:$0x75316420]  ;;  %vm823_vm8 = vcmask 1047559   ;;  %vm832_vm9 = vcmask 130048  }
  0x4e   : > { %2624 = vmatpush3.bf16.msra.mxu1 %v3178_v27  ;;  %v3206_v36 = vsub.s32 %v693_v32, %v695_v31  ;;  %v2522_v43 = vld.sshfl [vmem:[%s583_s17 + $0x4] sm:$0x1 pattern:$0x75316420]  ;;  %v2517_v15 = vld [vmem:[%s3632_s6] ss:$0 sm:$0xff] }
  0x4f   : > { %2637 = vmatprep.subr.bf16.mxu1 %v3000_v26  ;;  %v2523_v47 = vld.sshfl [vmem:[%s583_s17 + $0x5] sm:$0x1 pattern:$0x75316420]  ;;  %vm1533_vm10 = vcmask 261127   ;;  %s3634_s7 = sld [smem:[#allocation21_spill]] }
  0x50   : > { %v697_v39 = vrot.slane %v2518_v35, %v3206_v36  ;;  %v711_v40 = vrot.slane %v2519_v37, %v3206_v36  ;;  %v725_v42 = vrot.slane %v2520_v38, %v3206_v36  ;;  %v739_v44 = vrot.slane %v2521_v41, %v3206_v36  ;;  %v2524_v50 = vld.sshfl [vmem:[%s583_s17 + $0x6] sm:$0x1 pattern:$0x75316420]  ;;  %s639_s29 = scalar_lea.vmem [#allocation6], %s3196_s20 }
  0x51   : > { %2626 = vmatmul.mubr.msk.bf16.vlgmr.msra.gmra.mxu1 %vm895_vm1, %v882_v34  ;;  %v753_v48 = vrot.slane %v2522_v43, %v3206_v36  ;;  %v767_v51 = vrot.slane %v2523_v47, %v3206_v36  ;;  %v2525_v54 = vld.sshfl [vmem:[%s583_s17 + $0x7] sm:$0x1 pattern:$0x75316420]  ;;  %v781_v55 = vrot.slane %v2524_v50, %v3206_v36  ;;  %s657_s17 = scalar_lea.vmem %s3633_s3, %s3193_s13  ;;  %s2514_s13 = sshll.u32 %s3190_s19, 4  ;;  %vm2244_vm11 = vcmask 122880  }
  0x52   : > { %2638 = vmatpush3.bf16.msra.mxu1 %v3170_v24  ;;  %2641 = vmatprep.mubr.msk.bf16.mxu1 %vm3001_vm0, %v3000_v26  ;;  %v796_v45 = vunpack.c.l.b16 %v697_v39  ;;  %v797_v46 = vunpack.c.l.b16 %v711_v40  ;;  %v798_v49 = vunpack.c.l.b16 %v725_v42  ;;  %v799_v52 = vunpack.c.l.b16 %v739_v44  ;;  %v2532_v23 = vld [vmem:[%s657_s17] ss:$0 sm:$0xff]  ;;  %s3343_s28 = scalar_lea.vmem [#allocation3], %s2514_s13  ;;  %s3005_s13 = smov 96  }
  0x53   : > { %2639 = vmatprep.subr.bf16.mxu1 %v3000_v26  ;;  %v800_v56 = vunpack.c.l.b16 %v753_v48  ;;  %v795_v58 = vrot.slane %v2525_v54, %v3206_v36  ;;  %v801_v59 = vunpack.c.l.b16 %v767_v51  ;;  %v802_v62 = vunpack.c.l.b16 %v781_v55  ;;  %s2258_s17 = sand.u32 1, %s3098_s25   ;;  %s2294_s1 = sshll.u32 %s639_s29, 4  ;;  %s3461_s1 = int_to_ptr.vmem [resolvable:$true] %s2294_s1 }
  0x54   : > { %v804_v53 = vrot.slane %v797_v46, 7  ;;  %v807_v57 = vrot.slane %v798_v49, 6  ;;  %v810_v61 = vrot.slane %v799_v52, 5  ;;  %s3463_s2 = scalar_lea.sflag [#allocation7], %s2258_s17 }
  0x55   : > { %v813_v0 = vrot.slane %v800_v56, 4  ;;  %v803_v1 = vunpack.c.l.b16 %v795_v58  ;;  %v816_v3 = vrot.slane %v801_v59, 3  ;;  %v819_v5 = vrot.slane %v802_v62, 2 }
  0x56   : > { %2640 = vmatpush3.bf16.msra.mxu1 %v3178_v27  ;;  %v806_v60 = vsel %vm805_vm2, %v804_v53, %v796_v45 }
  0x57   : > { %2653 = vmatprep.subr.bf16.mxu1 %v3000_v26  ;;  %v809_v63 = vsel %vm808_vm3, %v807_v57, %v806_v60  ;;  %v822_v7 = vrot.slane %v803_v1, 1 }
  0x58   : > { %v812_v2 = vsel %vm811_vm4, %v810_v61, %v809_v63 }
  0x59   : > { %v815_v4 = vsel %vm814_vm5, %v813_v0, %v812_v2 }
  0x5a   : > { %v818_v6 = vsel %vm817_vm6, %v816_v3, %v815_v4 }
  0x5b   : > { %v821_v8 = vsel %vm820_vm7, %v819_v5, %v818_v6 }
  0x5c   : > { %v824_v9 = vsel %vm823_vm8, %v822_v7, %v821_v8 }
  0x5d   : > { %v825_v10 = vpack.c.b16 %v824_v9, %v824_v9 }
  0x5f   : > { %2618 = vmatmul.mubr.msk.bf16.vlgmr.msra.gmra.mxu0 %vm832_vm9, %v825_v10 }
  0x60   : > { %2630 = vmatpush3.bf16.msra.mxu0 %v3170_v24  ;;  %2633 = vmatprep.mubr.msk.bf16.mxu0 %vm3001_vm0, %v3000_v26 }
  0x61   : > { %2631 = vmatprep.subr.bf16.mxu0 %v3000_v26 }
  0x64   : > { %2632 = vmatpush3.bf16.msra.mxu0 %v3178_v27 }
  0x65   : > { %2645 = vmatprep.subr.bf16.mxu0 %v3000_v26 }
 0x111   : > { %v933_v11 = vpop.f32.mrf.mxu1 }
 0x113   : > { %v2627_v12 = vpop.f32.mrf.mxu1 }
 0x115   : > { %v936_v13 = vpop.f32.mrf.mxu1 }
 0x117   : > { %v2628_v14 = vpop.f32.mrf.mxu1 }
 0x11f   : > { %v870_v16 = vpop.f32.mrf.mxu0 }
 0x120   : > { %v3240_v17 = vadd.f32 %v2517_v15, %v870_v16 }
 0x121   : > { %v2619_v18 = vpop.f32.mrf.mxu0 }
 0x122   : > { %v939_v19 = vadd.f32 %v933_v11, %v3240_v17 }
 0x123   : > { %v873_v20 = vpop.f32.mrf.mxu0 }
 0x124   : > { %2782 = vtanh.f32 %v939_v19  ;;  %v2531_v25 = vmul.f32 -1.442695, %v939_v19 }
 0x125   : > { %v2620_v21 = vpop.f32.mrf.mxu0 }
 0x126   : > { %2784 = vpow2.f32 %v2531_v25 }
 0x131   : > { %v2783_v22 = vpop.eup %2782 }
 0x132   : > { %957 = vrot.lane.b32.xlu0 %v2783_v22, %s3003_s26 }
 0x133   : > { %v2785_v28 = vpop.eup %2784 }
 0x134   : > { %v943_v29 = vadd.f32 1.0, %v2785_v28 }
 0x136   : > { %952 = vrot.lane.b32.xlu0 %v2532_v23, %s3612_s18  ;;  %2786 = vrcp.f32 %v943_v29 }
 0x143   : > { %v2787_v30 = vpop.eup %2786 }
 0x1a4   : > { %v958_v31 = vpop.permute.xlu0 %957 }
 0x1a5   : > { %v960_v32 = vmul.f32 %v2787_v30, %v958_v31 }
 0x1a7   : > { %962 = vrot.lane.b32.xlu1 %v960_v32, %s3612_s18 }
 0x1a8   : > { %v953_v33 = vpop.permute.xlu0 %952 }
 0x1a9   : > { %v955_v34 = vmul.f32 %v2787_v30, %v953_v33 }
 0x219   : > { %v963_v35 = vpop.permute.xlu1 %962 }
 0x21a   : > { %v965_v37 = vadd.f32 %v963_v35, %v955_v34 }
 0x21c   : > { %2788 = vtanh.f32 %v965_v37  ;;  %v1031_v56 = vrot.slane %v965_v37, 7 }
 0x229   : > { %v2789_v38 = vpop.eup %2788 }
 0x22a   : > { %968 = vrot.lane.b32.xlu1 %v2789_v38, %s3003_s26 }
 0x29c   : > { %v969_v39 = vpop.permute.xlu1 %968 }
 0x29d   : > { %v971_v40 = vmul.f32 %v2787_v30, %v969_v39 }
 0x29f   : > { %v972_v41 = vpack.c.bf16 %v971_v40, %v971_v40 }
 0x2a1   : > { %974 = vrot.lane.b32.xlu0 %v972_v41, %s3612_s18  ;;  %v1598_v4 = vunpack.c.l.b16 %v972_v41 }
 0x313   : > { %v975_v42 = vpop.permute.xlu0 %974 }
 0x314   : > { %2634 = vmatmul.mubr.msk.bf16.vlgmr.msra.gmra.mxu0 %vm895_vm1, %v975_v42 }
 0x315   : > { %2646 = vmatpush3.bf16.msra.mxu0 %v3170_v24  ;;  %2649 = vmatprep.mubr.msk.bf16.mxu0 %vm3001_vm0, %v3000_v26 }
 0x316   : > { %2647 = vmatprep.subr.bf16.mxu0 %v3000_v26 }
 0x319   : > { %2648 = vmatpush3.bf16.msra.mxu0 %v3178_v27 }
 0x31a   : > { %2661 = vmatprep.subr.bf16.mxu0 %v3000_v26 }
 0x3d4   : > { %v1013_v43 = vpop.f32.mrf.mxu0 }
 0x3d5   : > { %v1020_v44 = vrot.slane %v1013_v43, 7 }
 0x3d6   : > { %v2635_v45 = vpop.f32.mrf.mxu0 }
 0x3d7   : > { %v1022_v46 = vadd.f32 %v1020_v44, %v3240_v17 }
 0x3d8   : > { %v1016_v47 = vpop.f32.mrf.mxu0 }
 0x3d9   : > { %2790 = vtanh.f32 %v1022_v46  ;;  %v2534_v50 = vmul.f32 -1.442695, %v1022_v46 }
 0x3da   : > { %v2636_v48 = vpop.f32.mrf.mxu0 }
 0x3db   : > { %2792 = vpow2.f32 %v2534_v50 }
 0x3e6   : > { %v2791_v49 = vpop.eup %2790 }
 0x3e7   : > { %1035 = vrot.lane.b32.xlu1 %v2791_v49, %s3003_s26 }
 0x3e8   : > { %v2793_v51 = vpop.eup %2792 }
 0x3e9   : > { %v1026_v52 = vadd.f32 1.0, %v2793_v51 }
 0x3eb   : > { %2794 = vrcp.f32 %v1026_v52 }
 0x3f8   : > { %v2795_v53 = vpop.eup %2794 }
 0x3f9   : > { %v1033_v57 = vmul.f32 %v2795_v53, %v1031_v56 }
 0x459   : > { %v1036_v54 = vpop.permute.xlu1 %1035 }
 0x45a   : > { %v1038_v55 = vmul.f32 %v2795_v53, %v1036_v54 }
 0x45c   : > { %1040 = vrot.lane.b32.xlu0 %v1038_v55, %s3612_s18 }
 0x4ce   : > { %v1041_v58 = vpop.permute.xlu0 %1040 }
 0x4cf   : > { %v1043_v59 = vadd.f32 %v1041_v58, %v1033_v57 }
 0x4d1   : > { %2796 = vtanh.f32 %v1043_v59  ;;  %v1111_v22 = vrot.slane %v1043_v59, 7 }
 0x4de   : > { %v2797_v60 = vpop.eup %2796 }
 0x4df   : > { %1046 = vrot.lane.b32.xlu1 %v2797_v60, %s3003_s26 }
 0x551   : > { %v1047_v61 = vpop.permute.xlu1 %1046 }
 0x552   : > { %v1049_v62 = vmul.f32 %v2795_v53, %v1047_v61 }
 0x554   : > { %v1050_v63 = vpack.c.bf16 %v1049_v62, %v1049_v62  ;;  %v1541_v0 = vrot.slane %v1049_v62, 1 }
 0x556   : > { %v1052_v1 = vshrl.u32 %v1050_v63, 16  ;;  %v1560_v2 = vpack.c.bf16 %v1541_v0, %v1541_v0 }
 0x558   : > { %v1599_v3 = vunpack.c.l.b16 %v1560_v2  ;;  %1054 = vrot.lane.b32.xlu0 %v1052_v1, %s3612_s18 }
 0x55a   : > { %v1606_v5 = vrot.slane %v1599_v3, 7 }
 0x55c   : > { %v1607_v6 = vsel %vm805_vm2, %v1606_v5, %v1598_v4 }
 0x5ca   : > { %v1055_v7 = vpop.permute.xlu0 %1054 }
 0x5cb   : > { %2642 = vmatmul.mubr.msk.bf16.vlgmr.msra.gmra.mxu1 %vm895_vm1, %v1055_v7 }
 0x5cc   : > { %2654 = vmatpush3.bf16.msra.mxu1 %v3170_v24  ;;  %2657 = vmatprep.mubr.msk.bf16.mxu1 %vm3001_vm0, %v3000_v26 }
 0x5cd   : > { %2655 = vmatprep.subr.bf16.mxu1 %v3000_v26 }
 0x5d0   : > { %2656 = vmatpush3.bf16.msra.mxu1 %v3178_v27 }
 0x5d1   : > { %2669 = vmatprep.subr.bf16.mxu1 %v3000_v26 }
 0x68b   : > { %v1093_v8 = vpop.f32.mrf.mxu1 }
 0x68c   : > { %v1100_v9 = vrot.slane %v1093_v8, 6 }
 0x68d   : > { %v2643_v10 = vpop.f32.mrf.mxu1 }
 0x68e   : > { %v1102_v11 = vadd.f32 %v1100_v9, %v3240_v17 }
 0x68f   : > { %v1096_v12 = vpop.f32.mrf.mxu1 }
 0x690   : > { %2798 = vtanh.f32 %v1102_v11  ;;  %v2536_v15 = vmul.f32 -1.442695, %v1102_v11 }
 0x691   : > { %v2644_v13 = vpop.f32.mrf.mxu1 }
 0x692   : > { %2800 = vpow2.f32 %v2536_v15 }
 0x69d   : > { %v2799_v14 = vpop.eup %2798 }
 0x69e   : > { %1115 = vrot.lane.b32.xlu1 %v2799_v14, %s3003_s26 }
 0x69f   : > { %v2801_v16 = vpop.eup %2800 }
 0x6a0   : > { %v1106_v18 = vadd.f32 1.0, %v2801_v16 }
 0x6a2   : > { %2802 = vrcp.f32 %v1106_v18 }
 0x6af   : > { %v2803_v19 = vpop.eup %2802 }
 0x6b0   : > { %v1113_v23 = vmul.f32 %v2803_v19, %v1111_v22 }
 0x710   : > { %v1116_v20 = vpop.permute.xlu1 %1115 }
 0x711   : > { %v1118_v21 = vmul.f32 %v2803_v19, %v1116_v20 }
 0x713   : > { %1120 = vrot.lane.b32.xlu0 %v1118_v21, %s3612_s18 }
 0x785   : > { %v1121_v25 = vpop.permute.xlu0 %1120 }
 0x786   : > { %v1123_v28 = vadd.f32 %v1121_v25, %v1113_v23 }
 0x788   : > { %2804 = vtanh.f32 %v1123_v28  ;;  %v1190_v54 = vrot.slane %v1123_v28, 7 }
 0x795   : > { %v2805_v29 = vpop.eup %2804 }
 0x796   : > { %1126 = vrot.lane.b32.xlu1 %v2805_v29, %s3003_s26 }
 0x808   : > { %v1127_v30 = vpop.permute.xlu1 %1126 }
 0x809   : > { %v1129_v31 = vmul.f32 %v2803_v19, %v1127_v30 }
 0x80b   : > { %v1130_v32 = vpack.c.bf16 %v1129_v31, %v1129_v31  ;;  %v1544_v33 = vrot.slane %v1129_v31, 2 }
 0x80d   : > { %v1132_v34 = vrot.slane %v1130_v32, 1  ;;  %v1561_v35 = vpack.c.bf16 %v1544_v33, %v1544_v33 }
 0x80f   : > { %v1600_v37 = vunpack.c.l.b16 %v1561_v35  ;;  %1133 = vrot.lane.b32.xlu0 %v1132_v34, %s3612_s18 }
 0x811   : > { %v1608_v38 = vrot.slane %v1600_v37, 6 }
 0x813   : > { %v1609_v39 = vsel %vm808_vm3, %v1608_v38, %v1607_v6 }
 0x881   : > { %v1134_v40 = vpop.permute.xlu0 %1133 }
 0x882   : > { %2650 = vmatmul.mubr.msk.bf16.vlgmr.msra.gmra.mxu0 %vm895_vm1, %v1134_v40 }
 0x883   : > { %2662 = vmatpush3.bf16.msra.mxu0 %v3170_v24  ;;  %2665 = vmatprep.mubr.msk.bf16.mxu0 %vm3001_vm0, %v3000_v26 }
 0x884   : > { %2663 = vmatprep.subr.bf16.mxu0 %v3000_v26 }
 0x887   : > { %2664 = vmatpush3.bf16.msra.mxu0 %v3178_v27 }
 0x888   : > { %2677 = vmatprep.subr.bf16.mxu0 %v3000_v26 }
 0x942   : > { %v1172_v41 = vpop.f32.mrf.mxu0 }
 0x943   : > { %v1179_v42 = vrot.slane %v1172_v41, 5 }
 0x944   : > { %v2651_v43 = vpop.f32.mrf.mxu0 }
 0x945   : > { %v1181_v44 = vadd.f32 %v1179_v42, %v3240_v17 }
 0x946   : > { %v1175_v45 = vpop.f32.mrf.mxu0 }
 0x947   : > { %2806 = vtanh.f32 %v1181_v44  ;;  %v2538_v48 = vmul.f32 -1.442695, %v1181_v44 }
 0x948   : > { %v2652_v46 = vpop.f32.mrf.mxu0 }
 0x949   : > { %2808 = vpow2.f32 %v2538_v48 }
 0x954   : > { %v2807_v47 = vpop.eup %2806 }
 0x955   : > { %1194 = vrot.lane.b32.xlu1 %v2807_v47, %s3003_s26 }
 0x956   : > { %v2809_v49 = vpop.eup %2808 }
 0x957   : > { %v1185_v50 = vadd.f32 1.0, %v2809_v49 }
 0x959   : > { %2810 = vrcp.f32 %v1185_v50 }
 0x966   : > { %v2811_v51 = vpop.eup %2810 }
 0x967   : > { %v1192_v55 = vmul.f32 %v2811_v51, %v1190_v54 }
 0x9c7   : > { %v1195_v52 = vpop.permute.xlu1 %1194 }
 0x9c8   : > { %v1197_v53 = vmul.f32 %v2811_v51, %v1195_v52 }
 0x9ca   : > { %1199 = vrot.lane.b32.xlu0 %v1197_v53, %s3612_s18 }
 0xa3c   : > { %v1200_v56 = vpop.permute.xlu0 %1199 }
 0xa3d   : > { %v1202_v57 = vadd.f32 %v1200_v56, %v1192_v55 }
 0xa3f   : > { %2812 = vtanh.f32 %v1202_v57  ;;  %v1271_v20 = vrot.slane %v1202_v57, 7 }
 0xa4c   : > { %v2813_v58 = vpop.eup %2812 }
 0xa4d   : > { %1205 = vrot.lane.b32.xlu1 %v2813_v58, %s3003_s26 }
 0xabf   : > { %v1206_v59 = vpop.permute.xlu1 %1205 }
 0xac0   : > { %v1208_v60 = vmul.f32 %v2811_v51, %v1206_v59 }
 0xac2   : > { %v1209_v61 = vpack.c.bf16 %v1208_v60, %v1208_v60  ;;  %v1547_v62 = vrot.slane %v1208_v60, 3 }
 0xac4   : > { %v1211_v63 = vshrl.u32 %v1209_v61, 16  ;;  %v1562_v0 = vpack.c.bf16 %v1547_v62, %v1547_v62 }
 0xac6   : > { %v1213_v1 = vrot.slane %v1211_v63, 1  ;;  %v1601_v2 = vunpack.c.l.b16 %v1562_v0 }
 0xac8   : > { %v1610_v3 = vrot.slane %v1601_v2, 5  ;;  %1214 = vrot.lane.b32.xlu0 %v1213_v1, %s3612_s18 }
 0xaca   : > { %v1611_v4 = vsel %vm811_vm4, %v1610_v3, %v1609_v39 }
 0xb3a   : > { %v1215_v5 = vpop.permute.xlu0 %1214 }
 0xb3b   : > { %2658 = vmatmul.mubr.msk.bf16.vlgmr.msra.gmra.mxu1 %vm895_vm1, %v1215_v5 }
 0xb3c   : > { %2670 = vmatpush3.bf16.msra.mxu1 %v3170_v24  ;;  %2673 = vmatprep.mubr.msk.bf16.mxu1 %vm3001_vm0, %v3000_v26 }
 0xb3d   : > { %2671 = vmatprep.subr.bf16.mxu1 %v3000_v26 }
 0xb40   : > { %2672 = vmatpush3.bf16.msra.mxu1 %v3178_v27 }
 0xb41   : > { %2685 = vmatprep.subr.bf16.mxu1 %v3000_v26 }
 0xbfb   : > { %v1253_v6 = vpop.f32.mrf.mxu1 }
 0xbfc   : > { %v1260_v7 = vrot.slane %v1253_v6, 4 }
 0xbfd   : > { %v2659_v8 = vpop.f32.mrf.mxu1 }
 0xbfe   : > { %v1262_v9 = vadd.f32 %v1260_v7, %v3240_v17 }
 0xbff   : > { %v1256_v10 = vpop.f32.mrf.mxu1 }
 0xc00   : > { %2814 = vtanh.f32 %v1262_v9  ;;  %v2540_v13 = vmul.f32 -1.442695, %v1262_v9 }
 0xc01   : > { %v2660_v11 = vpop.f32.mrf.mxu1 }
 0xc02   : > { %2816 = vpow2.f32 %v2540_v13 }
 0xc0d   : > { %v2815_v12 = vpop.eup %2814 }
 0xc0e   : > { %1275 = vrot.lane.b32.xlu1 %v2815_v12, %s3003_s26 }
 0xc0f   : > { %v2817_v14 = vpop.eup %2816 }
 0xc10   : > { %v1266_v15 = vadd.f32 1.0, %v2817_v14 }
 0xc12   : > { %2818 = vrcp.f32 %v1266_v15 }
 0xc1f   : > { %v2819_v16 = vpop.eup %2818 }
 0xc20   : > { %v1273_v21 = vmul.f32 %v2819_v16, %v1271_v20 }
 0xc80   : > { %v1276_v18 = vpop.permute.xlu1 %1275 }
 0xc81   : > { %v1278_v19 = vmul.f32 %v2819_v16, %v1276_v18 }
 0xc83   : > { %1280 = vrot.lane.b32.xlu0 %v1278_v19, %s3612_s18 }
 0xcf5   : > { %v1281_v22 = vpop.permute.xlu0 %1280 }
 0xcf6   : > { %v1283_v23 = vadd.f32 %v1281_v22, %v1273_v21 }
 0xcf8   : > { %2820 = vtanh.f32 %v1283_v23  ;;  %v1350_v50 = vrot.slane %v1283_v23, 7 }
 0xd05   : > { %v2821_v25 = vpop.eup %2820 }
 0xd06   : > { %1286 = vrot.lane.b32.xlu1 %v2821_v25, %s3003_s26 }
 0xd78   : > { %v1287_v28 = vpop.permute.xlu1 %1286 }
 0xd79   : > { %v1289_v29 = vmul.f32 %v2819_v16, %v1287_v28 }
 0xd7b   : > { %v1290_v30 = vpack.c.bf16 %v1289_v29, %v1289_v29  ;;  %v1550_v31 = vrot.slane %v1289_v29, 4 }
 0xd7d   : > { %v1292_v32 = vrot.slane %v1290_v30, 2  ;;  %v1563_v33 = vpack.c.bf16 %v1550_v31, %v1550_v31 }
 0xd7f   : > { %v1602_v34 = vunpack.c.l.b16 %v1563_v33  ;;  %1293 = vrot.lane.b32.xlu0 %v1292_v32, %s3612_s18 }
 0xd81   : > { %v1612_v35 = vrot.slane %v1602_v34, 4 }
 0xd83   : > { %v1613_v37 = vsel %vm814_vm5, %v1612_v35, %v1611_v4 }
 0xdf1   : > { %v1294_v38 = vpop.permute.xlu0 %1293 }
 0xdf2   : > { %2666 = vmatmul.mubr.msk.bf16.vlgmr.msra.gmra.mxu0 %vm895_vm1, %v1294_v38 }
 0xdf3   : > { %2678 = vmatpush3.bf16.msra.mxu0 %v3170_v24  ;;  %2681 = vmatprep.mubr.msk.bf16.mxu0 %vm3001_vm0, %v3000_v26 }
 0xdf4   : > { %2679 = vmatprep.subr.bf16.mxu0 %v3000_v26 }
 0xdf7   : > { %2680 = vmatpush3.bf16.msra.mxu0 %v3178_v27 }
 0xdf8   : > { %2691 = vmatprep.subr.bf16.mxu0 %v3000_v26 }
 0xeb2   : > { %v1332_v39 = vpop.f32.mrf.mxu0 }
 0xeb3   : > { %v1339_v40 = vrot.slane %v1332_v39, 3 }
 0xeb4   : > { %v2667_v41 = vpop.f32.mrf.mxu0 }
 0xeb5   : > { %v1341_v42 = vadd.f32 %v1339_v40, %v3240_v17 }
 0xeb6   : > { %v1335_v43 = vpop.f32.mrf.mxu0 }
 0xeb7   : > { %2822 = vtanh.f32 %v1341_v42  ;;  %v2542_v24 = vmul.f32 -1.442695, %v1341_v42 }
 0xeb8   : > { %v2668_v44 = vpop.f32.mrf.mxu0 }
 0xeb9   : > { %2824 = vpow2.f32 %v2542_v24 }
 0xec4   : > { %v2823_v45 = vpop.eup %2822 }
 0xec5   : > { %1354 = vrot.lane.b32.xlu1 %v2823_v45, %s3003_s26 }
 0xec6   : > { %v2825_v46 = vpop.eup %2824 }
 0xec7   : > { %v1345_v47 = vadd.f32 1.0, %v2825_v46 }
 0xec9   : > { %2826 = vrcp.f32 %v1345_v47 }
 0xed6   : > { %v2827_v48 = vpop.eup %2826 }
 0xed7   : > { %v1352_v51 = vmul.f32 %v2827_v48, %v1350_v50  ;;  %v2547_v50 = vld.sshfl [vmem:[%s3343_s28] sm:$0x1 pattern:$0x75316420] }
 0xf37   : > { %v1355_v27 = vpop.permute.xlu1 %1354 }
 0xf38   : > { %v1357_v49 = vmul.f32 %v2827_v48, %v1355_v27 }
 0xf3a   : > { %1359 = vrot.lane.b32.xlu0 %v1357_v49, %s3612_s18 }
 0xfac   : > { %v1360_v52 = vpop.permute.xlu0 %1359 }
 0xfad   : > { %v1362_v53 = vadd.f32 %v1360_v52, %v1352_v51  ;;  %v2548_v51 = vld.sshfl [vmem:[%s3343_s28 + $0x1] sm:$0x1 pattern:$0x75316420]  ;;  %v1652_v52 = vrot.slane %v2547_v50, %v3206_v36 }
 0xfaf   : > { %2828 = vtanh.f32 %v1362_v53  ;;  %v1431_v15 = vrot.slane %v1362_v53, 7  ;;  %v2549_v53 = vld.sshfl [vmem:[%s3343_s28 + $0x2] sm:$0x1 pattern:$0x75316420] }
 0xfbc   : > { %v2829_v54 = vpop.eup %2828 }
 0xfbd   : > { %1365 = vrot.lane.b32.xlu1 %v2829_v54, %s3003_s26  ;;  %v1666_v54 = vrot.slane %v2548_v51, %v3206_v36 }
0x102f   : > { %v1366_v55 = vpop.permute.xlu1 %1365 }
0x1030   : > { %v1368_v56 = vmul.f32 %v2827_v48, %v1366_v55  ;;  %v2550_v55 = vld.sshfl [vmem:[%s3343_s28 + $0x3] sm:$0x1 pattern:$0x75316420] }
0x1032   : > { %v1369_v57 = vpack.c.bf16 %v1368_v56, %v1368_v56  ;;  %v1553_v58 = vrot.slane %v1368_v56, 5  ;;  %v1680_v56 = vrot.slane %v2549_v53, %v3206_v36 }
0x1034   : > { %v1371_v59 = vshrl.u32 %v1369_v57, 16  ;;  %v1564_v60 = vpack.c.bf16 %v1553_v58, %v1553_v58  ;;  %v2551_v57 = vld.sshfl [vmem:[%s3343_s28 + $0x4] sm:$0x1 pattern:$0x75316420]  ;;  %v1694_v58 = vrot.slane %v2550_v55, %v3206_v36 }
0x1036   : > { %v1373_v61 = vrot.slane %v1371_v59, 2  ;;  %v1603_v62 = vunpack.c.l.b16 %v1564_v60  ;;  %v1863_v59 = vunpack.c.l.b16 %v1652_v52  ;;  %v1864_v60 = vunpack.c.l.b16 %v1666_v54 }
0x1038   : > { %v1614_v63 = vrot.slane %v1603_v62, 3  ;;  %1374 = vrot.lane.b32.xlu0 %v1373_v61, %s3612_s18  ;;  %v2552_v61 = vld.sshfl [vmem:[%s3343_s28 + $0x5] sm:$0x1 pattern:$0x75316420]  ;;  %v1708_v62 = vrot.slane %v2551_v57, %v3206_v36 }
0x103a   : > { %v1615_v0 = vsel %vm817_vm6, %v1614_v63, %v1613_v37  ;;  %v1865_v63 = vunpack.c.l.b16 %v1680_v56 }
0x10aa   : > { %v1375_v1 = vpop.permute.xlu0 %1374 }
0x10ab   : > { %2674 = vmatmul.mubr.msk.bf16.vlgmr.msra.gmra.mxu1 %vm895_vm1, %v1375_v1  ;;  %v1722_v1 = vrot.slane %v2552_v61, %v3206_v36 }
0x10ac   : > { %2687 = vmatprep.mubr.msk.bf16.mxu1 %vm3001_vm0, %v3000_v26 }
0x116b   : > { %v1413_v2 = vpop.f32.mrf.mxu1 }
0x116c   : > { %v1420_v3 = vrot.slane %v1413_v2, 2  ;;  %v1866_v2 = vunpack.c.l.b16 %v1694_v58 }
0x116d   : > { %v2675_v4 = vpop.f32.mrf.mxu1 }
0x116e   : > { %v1422_v5 = vadd.f32 %v1420_v3, %v3240_v17  ;;  %v1879_v3 = vrot.slane %v1864_v60, 7  ;;  %v2554_v4 = vld.sshfl [vmem:[%s3343_s28 + $0x7] sm:$0x1 pattern:$0x75316420] }
0x116f   : > { %v1416_v6 = vpop.f32.mrf.mxu1 }
0x1170   : > { %2830 = vtanh.f32 %v1422_v5  ;;  %v2544_v9 = vmul.f32 -1.442695, %v1422_v5  ;;  %v1867_v6 = vunpack.c.l.b16 %v1708_v62 }
0x1171   : > { %v2676_v7 = vpop.f32.mrf.mxu1 }
0x1172   : > { %2832 = vpow2.f32 %v2544_v9  ;;  %v1881_v7 = vrot.slane %v1865_v63, 6  ;;  %v1750_v9 = vrot.slane %v2554_v4, %v3206_v36 }
0x117d   : > { %v2831_v8 = vpop.eup %2830 }
0x117e   : > { %1435 = vrot.lane.b32.xlu1 %v2831_v8, %s3003_s26  ;;  %v2555_v8 = vld.sshfl [vmem:[%s3343_s28 + $0x8] sm:$0x1 pattern:$0x75316420] }
0x117f   : > { %v2833_v10 = vpop.eup %2832 }
0x1180   : > { %v1426_v11 = vadd.f32 1.0, %v2833_v10  ;;  %v1868_v10 = vunpack.c.l.b16 %v1722_v1 }
0x1182   : > { %2834 = vrcp.f32 %v1426_v11  ;;  %v1880_v11 = vsel %vm805_vm2, %v1879_v3, %v1863_v59 }
0x118f   : > { %v2835_v12 = vpop.eup %2834 }
0x1190   : > { %v1433_v16 = vmul.f32 %v2835_v12, %v1431_v15 }
0x11f0   : > { %v1436_v13 = vpop.permute.xlu1 %1435 }
0x11f1   : > { %v1438_v14 = vmul.f32 %v2835_v12, %v1436_v13  ;;  %v2556_v13 = vld.sshfl [vmem:[%s3343_s28 + $0x9] sm:$0x1 pattern:$0x75316420] }
0x11f3   : > { %1440 = vrot.lane.b32.xlu0 %v1438_v14, %s3612_s18  ;;  %v1764_v14 = vrot.slane %v2555_v8, %v3206_v36 }
0x1265   : > { %v1441_v18 = vpop.permute.xlu0 %1440 }
0x1266   : > { %v1443_v19 = vadd.f32 %v1441_v18, %v1433_v16  ;;  %v1882_v16 = vsel %vm808_vm3, %v1881_v7, %v1880_v11  ;;  %v1885_v18 = vrot.slane %v1867_v6, 4 }
0x1268   : > { %2836 = vtanh.f32 %v1443_v19 }
0x1275   : > { %v2837_v20 = vpop.eup %2836 }
0x1276   : > { %1446 = vrot.lane.b32.xlu1 %v2837_v20, %s3003_s26  ;;  %v1778_v20 = vrot.slane %v2556_v13, %v3206_v36  ;;  %v2778_v13 = vld [vmem:[%s3605_s8 + $0x8] sm:$0xff]  }
0x12e8   : > { %v1447_v21 = vpop.permute.xlu1 %1446 }
0x12e9   : > { %v1449_v22 = vmul.f32 %v2835_v12, %v1447_v21  ;;  %v1883_v12 = vrot.slane %v1866_v2, 5 }
0x12eb   : > { %v1450_v23 = vpack.c.bf16 %v1449_v22, %v1449_v22  ;;  %v1556_v25 = vrot.slane %v1449_v22, 6  ;;  %v1884_v21 = vsel %vm811_vm4, %v1883_v12, %v1882_v16  ;;  %v1887_v22 = vrot.slane %v1868_v10, 3 }
0x12ed   : > { %v1452_v28 = vrot.slane %v1450_v23, 3  ;;  %v1565_v29 = vpack.c.bf16 %v1556_v25, %v1556_v25  ;;  %v2558_v23 = vld.sshfl [vmem:[%s3343_s28 + $0xb] sm:$0x1 pattern:$0x75316420] }
0x12ef   : > { %v1604_v30 = vunpack.c.l.b16 %v1565_v29  ;;  %1453 = vrot.lane.b32.xlu0 %v1452_v28, %s3612_s18  ;;  %v1870_v28 = vunpack.c.l.b16 %v1750_v9  ;;  %v1886_v29 = vsel %vm814_vm5, %v1885_v18, %v1884_v21 }
0x12f1   : > { %v1616_v31 = vrot.slane %v1604_v30, 2  ;;  %v2559_v30 = vld.sshfl [vmem:[%s3343_s28 + $0xc] sm:$0x1 pattern:$0x75316420] }
0x12f3   : > { %v3326_v32 = vsel %vm820_vm7, %v1616_v31, %v1615_v0  ;;  %v2553_v0 = vld.sshfl [vmem:[%s3343_s28 + $0x6] sm:$0x1 pattern:$0x75316420]  ;;  %v1806_v31 = vrot.slane %v2558_v23, %v3206_v36 }
0x12f4   : > { %v1736_v5 = vrot.slane %v2553_v0, %v3206_v36 }
0x12f6   : > { %v1869_v15 = vunpack.c.l.b16 %v1736_v5 }
0x1361   : > { %v1454_v33 = vpop.permute.xlu0 %1453 }
0x1362   : > { %2682 = vmatmul.mubr.msk.bf16.vlgmr.msra.gmra.mxu0 %vm895_vm1, %v1454_v33  ;;  %v1871_v33 = vunpack.c.l.b16 %v1764_v14 }
0x1363   : > { %2693 = vmatprep.mubr.msk.bf16.mxu0 %vm3001_vm0, %v3000_v26 }
0x1422   : > { %v1492_v34 = vpop.f32.mrf.mxu0 }
0x1423   : > { %v1499_v35 = vrot.slane %v1492_v34, 1  ;;  %v1872_v34 = vunpack.c.l.b16 %v1778_v20 }
0x1424   : > { %v2683_v37 = vpop.f32.mrf.mxu0 }
0x1425   : > { %v1501_v38 = vadd.f32 %v1499_v35, %v3240_v17  ;;  %v1510_v17 = vrot.slane %v1443_v19, 7  ;;  %v2557_v19 = vld.sshfl [vmem:[%s3343_s28 + $0xa] sm:$0x1 pattern:$0x75316420]  ;;  %v1820_v37 = vrot.slane %v2559_v30, %v3206_v36 }
0x1426   : > { %v1495_v39 = vpop.f32.mrf.mxu0  ;;  %v1792_v25 = vrot.slane %v2557_v19, %v3206_v36  ;;  %v2560_v35 = vld.sshfl [vmem:[%s3343_s28 + $0xd] sm:$0x1 pattern:$0x75316420] }
0x1427   : > { %2838 = vtanh.f32 %v1501_v38  ;;  %v2546_v42 = vmul.f32 -1.442695, %v1501_v38  ;;  %v1889_v39 = vrot.slane %v1869_v15, 2 }
0x1428   : > { %v2684_v40 = vpop.f32.mrf.mxu0  ;;  %v1873_v38 = vunpack.c.l.b16 %v1792_v25 }
0x1429   : > { %2840 = vpow2.f32 %v2546_v42  ;;  %v2561_v40 = vld.sshfl [vmem:[%s3343_s28 + $0xe] sm:$0x1 pattern:$0x75316420]  ;;  %v1874_v42 = vunpack.c.l.b16 %v1806_v31 }
0x142b   : > { %v1897_v52 = vrot.slane %v1874_v42, 5 }
0x1434   : > { %v2839_v41 = vpop.eup %2838 }
0x1435   : > { %1514 = vrot.lane.b32.xlu1 %v2839_v41, %s3003_s26  ;;  %v1834_v41 = vrot.slane %v2560_v35, %v3206_v36 }
0x1436   : > { %v2841_v43 = vpop.eup %2840 }
0x1437   : > { %v1505_v44 = vadd.f32 1.0, %v2841_v43  ;;  %v1888_v43 = vsel %vm817_vm6, %v1887_v22, %v1886_v29  ;;  %v1876_v50 = vunpack.c.l.b16 %v1834_v41 }
0x1438   : > { %v1890_v54 = vsel %vm820_vm7, %v1889_v39, %v1888_v43 }
0x1439   : > { %2842 = vrcp.f32 %v1505_v44  ;;  %v1893_v44 = vrot.slane %v1872_v34, 7  ;;  %v1901_v59 = vrot.slane %v1876_v50, 3 }
0x143b   : > { %v1894_v51 = vsel %vm805_vm2, %v1893_v44, %v1871_v33 }
0x1446   : > { %v3333_v45 = vpop.eup %2842 }
0x1447   : > { %v1512_v47 = vmul.f32 %v3333_v45, %v1510_v17  ;;  %v1875_v17 = vunpack.c.l.b16 %v1820_v37 }
0x1449   : > { %v1899_v56 = vrot.slane %v1875_v17, 4 }
0x14a7   : > { %v1515_v24 = vpop.permute.xlu1 %1514 }
0x14a8   : > { %v1517_v46 = vmul.f32 %v3333_v45, %v1515_v24  ;;  %v2562_v24 = vld.sshfl [vmem:[%s3343_s28 + $0xf] sm:$0x1 pattern:$0x75316420]  ;;  %s3611_s28 = scalar_lea.vmem [#allocation9], %s3190_s19 }
0x14aa   : > { %1519 = vrot.lane.b32.xlu0 %v1517_v46, %s3612_s18  ;;  %v1848_v46 = vrot.slane %v2561_v40, %v3206_v36 }
0x14ac   : > { %v1877_v53 = vunpack.c.l.b16 %v1848_v46 }
0x14ae   : > { %v1903_v61 = vrot.slane %v1877_v53, 2 }
0x151c   : > { %v1520_v48 = vpop.permute.xlu0 %1519 }
0x151d   : > { %v3338_v27 = vadd.f32 %v1520_v48, %v1512_v47  ;;  %v1891_v47 = vrot.slane %v1870_v28, 1  ;;  %v1895_v48 = vrot.slane %v1873_v38, 6  ;;  %v2780_v38 = vld [vmem:[%s3634_s7 + $0x8] sm:$0xff]  }
0x151f   : > { %2844 = vtanh.f32 %v3338_v27  ;;  %v1896_v55 = vsel %vm808_vm3, %v1895_v48, %v1894_v51  ;;  %v1892_v62 = vsel %vm823_vm8, %v1891_v47, %v1890_v54 }
0x1520   : > { %v1898_v58 = vsel %vm811_vm4, %v1897_v52, %v1896_v55 }
0x1521   : > { %v1900_v60 = vsel %vm814_vm5, %v1899_v56, %v1898_v58 }
0x1522   : > { %v1902_v63 = vsel %vm817_vm6, %v1901_v59, %v1900_v60 }
0x1523   : > { %v1904_v1 = vsel %vm820_vm7, %v1903_v61, %v1902_v63 }
0x152c   : > { %v2845_v49 = vpop.eup %2844 }
0x152d   : > { %1525 = vrot.lane.b32.xlu1 %v2845_v49, %s3003_s26  ;;  %v1862_v49 = vrot.slane %v2562_v24, %v3206_v36  ;;  %s645_s26 = scalar_lea.vmem [#allocation8], %s3190_s19  ;;  %v2781_v24 = vld [vmem:[%s3634_s7] sm:$0xff]  }
0x152e   : > { %s2310_s16 = sshll.u32 %s645_s26, 4  ;;  %s3459_s16 = int_to_ptr.vmem [resolvable:$true] %s2310_s16 }
0x152f   : > { %v1878_v57 = vunpack.c.l.b16 %v1862_v49 }
0x1531   : > { %v1905_v0 = vrot.slane %v1878_v57, 1 }
0x1533   : > { %v1906_v2 = vsel %vm823_vm8, %v1905_v0, %v1904_v1 }
0x1534   : > { %v1907_v3 = vpack.c.b16 %v1906_v2, %v1892_v62 }
0x1536   : > { %v1912_v4 = vsel %vm895_vm1, %v1907_v3, 0  ;;  %2692 = vmatpush3.bf16.msra.mxu0 %v1907_v3 }
0x1537   : > { %2686 = vmatpush3.bf16.xpose.msra.mxu1 %v1912_v4  ;;  %2705 = vmatprep.subr.bf16.mxu0 %v3000_v26 }
0x1538   : > { %2697 = vmatprep.subr.bf16.mxu1 %v3000_v26 }
0x159f   : > { %v1526_v5 = vpop.permute.xlu1 %1525 }
0x15a0   : > { %v1528_v6 = vmul.f32 %v3333_v45, %v1526_v5  ;;  %v2779_v45 = vld [vmem:[%s3605_s8] sm:$0xff]  }
0x15a2   : > { %v1558_v7 = vrot.slane %v1528_v6, 7 }
0x15a4   : > { %v1566_v8 = vpack.c.bf16 %v1558_v7, %v1558_v7 }
0x15a6   : > { %v1605_v9 = vunpack.c.l.b16 %v1566_v8 }
0x15a8   : > { %v1618_v10 = vrot.slane %v1605_v9, 1 }
0x15aa   : > { %v1619_v11 = vsel %vm823_vm8, %v1618_v10, %v3326_v32 }
0x15ab   : > { %v1620_v12 = vpack.c.b16 %v1619_v11, %v1619_v11 }
0x15ad   : > { %1621 = vrot.lane.b32.xlu0 %v1620_v12, %s3612_s18 }
0x161f   : > { %v1622_v14 = vpop.permute.xlu0 %1621 }
0x1620   : > { %2688 = vmatmul.mubr.msk.bf16.vlgmr.msra.gmra.mxu1 %vm895_vm1, %v1622_v14 }
0x1621   : > { %2698 = vmatpush3.bf16.msra.mxu1 %v2778_v13  ;;  %2701 = vmatprep.mubr.msk.bf16.mxu1 %vm3001_vm0, %v3000_v26 }
0x1622   : > { %2699 = vmatprep.subr.bf16.mxu1 %v3000_v26 }
0x1625   : > { %2700 = vmatpush3.bf16.msra.mxu1 %v2779_v45 }
0x1628   : > { %2702 = vmatmul.mubr.msk.bf16.vlgmr.msra.gmra.mxu1 %vm895_vm1, %v1622_v14 }
0x16e0   : > { %v1948_v32 = vpop.f32.mrf.mxu1 }
0x16e1   : > { %v1954_v15 = vsel %vm832_vm9, %v1948_v32, -inf }
0x16e2   : > { %1955 = vmax.xlane.f32.xlu1 %v1954_v15  ;;  %v2689_v16 = vpop.f32.mrf.mxu1 }
0x16e4   : > { %v1951_v18 = vpop.f32.mrf.mxu1 }
0x16e6   : > { %v2690_v19 = vpop.f32.mrf.mxu1 }
0x16e8   : > { %v3410_v20 = vpop.f32.mrf.mxu1 }
0x16ea   : > { %v2703_v21 = vpop.f32.mrf.mxu1 }
0x16ec   : > { %v2060_v22 = vpop.f32.mrf.mxu1 }
0x16ee   : > { %v2704_v23 = vpop.f32.mrf.mxu1 }
0x16f3   : > { %1536 = vrot.lane.b32.xlu1 %v3338_v27, %s3005_s13  ;;  %s3451_s13 = sshll.u32 %s3098_s25, 4  ;;  %s3006_s25 = smov [#allocation6]  }
0x16f4   : > { %s3457_s0 = scalar_lea.hbm %s3607_s10, %s3451_s13  ;;  %s2856_s3 = sshll.u32 %s3006_s25, 4  ;;  %s2857_s3 = int_to_ptr.vmem [resolvable:$false] %s2856_s3 }
0x16f5   : > { %p2859_p3 = scmp.lt.s32.totalorder %s3461_s1, %s2857_s3 }
0x176b   : > { %v1956_v25 = vpop.xlane.xlu1 %1955 }
0x176c   : > { %v1957_v28 = vsub.f32 %v1948_v32, %v1956_v25 }
0x176e   : > { %v1958_v29 = vmul.f32 1.442695, %v1957_v28 }
0x176f   : > { %v1537_v30 = vpop.permute.xlu1 %1536 }
0x1770   : > { %2846 = vpow2.f32 %v1958_v29  ;;  %1539 = vst.msk [vmem:[%s3611_s28 - $0x7] sm:$0x80] %vm1533_vm10, %v1537_v30 }
0x177d   : > { %v2847_v31 = vpop.eup %2846 }
0x177e   : > { %v1960_v33 = vsel %vm832_vm9, %v2847_v31, 0.0 }
0x177f   : > { %1961 = vadd.xlane.f32.xlu0 %v1960_v33 }
0x1795   : > { %1530 = vrot.lane.b32.xlu0 %v1528_v6, %s3612_s18  ;;  %s2858_s18 = scalar_lea.vmem %s2857_s3, 256 }
0x1808   : > { %v1962_v34 = vpop.xlane.xlu0 %1961 }
0x1809   : > { %2848 = vrcp.f32 %v1962_v34 }
0x180c   : > { %v1531_v27 = vpop.permute.xlu0 %1530 }
0x180d   : > { %1534 = vst.msk [vmem:[%s645_s26 - $0x7] sm:$0x80] %vm1533_vm10, %v1531_v27  ;;  %s2852_s26 = scalar_lea.vmem %s3461_s1, 128 }
0x180e   : > { %p2853_p0 = scmp.ne.s32.totalorder %s3461_s1, %s2852_s26  ;;  %p2860_p4 = scmp.lt.s32.totalorder %s2858_s18, %s2852_s26 }
0x1810   : > { %p2854_p1 = pnand %p2853_p0, %p3120_p6  ;;  %p2861_p5 = por %p2860_p4, %p2859_p3 }
0x1812   : > { %p2855_p2 = pneg %p2854_p1 }
0x1814   : > { %p2862_p7 = pnand %p2861_p5, %p2855_p2 }
0x1816   : > { %v2849_v35 = vpop.eup %2848 }
0x1817   : > { %v1964_v37 = vmul.f32 %v2849_v35, %v2847_v31 }
0x1819   : > { %v2187_v39 = vcombine.high %v1964_v37, %v1964_v37  ;;  %v2194_v40 = vrot.slane %v1964_v37, %v3206_v36  ;;  %v1965_v41 = vpack.c.bf16 %v1964_v37, %v1964_v37 }
0x181b   : > { %v2201_v42 = vrot.slane %v2187_v39, %v3206_v36  ;;  %v2202_v43 = vcombine.high %v2194_v40, %v2194_v40  ;;  %v2210_v44 = vrot.slane %v2194_v40, %v3206_v36  ;;  %2694 = vmatmul.mubr.msk.bf16.vlgmr.msra.gmra.mxu0 %vm832_vm9, %v1965_v41 }
0x181c   : > { %2706 = vmatpush3.bf16.msra.mxu0 %v2780_v38  ;;  %2709 = vmatprep.mubr.msk.bf16.mxu0 %vm3001_vm0, %v3000_v26 }
0x181d   : > { %v2203_v46 = vcombine.high %v2201_v42, %v2201_v42  ;;  %v2217_v17 = vrot.slane %v2201_v42, %v3206_v36  ;;  %v2224_v47 = vrot.slane %v2202_v43, %v3206_v36  ;;  %v2232_v48 = vcombine.high %v2210_v44, %v2210_v44  ;;  %2245 = vst.msk [vmem:[%s639_s29] sm:$0x1] %vm2244_vm11, %v2210_v44 }
0x181e   : > { %2707 = vmatprep.subr.bf16.mxu0 %v3000_v26 }
0x181f   : > { %v2231_v49 = vrot.slane %v2203_v46, %v3206_v36  ;;  %v2233_v50 = vcombine.high %v2217_v17, %v2217_v17  ;;  %v2234_v51 = vcombine.high %v2224_v47, %v2224_v47  ;;  %2246 = vst.msk [vmem:[%s639_s29 + $0x1] sm:$0x1] %vm2244_vm11, %v2224_v47  ;;  %2247 = vst.msk [vmem:[%s639_s29 + $0x2] sm:$0x1] %vm2244_vm11, %v2232_v48 }
0x1820   : > { %2249 = vst.msk [vmem:[%s639_s29 + $0x4] sm:$0x1] %vm2244_vm11, %v2217_v17  ;;  %2708 = vmatpush3.bf16.msra.mxu0 %v2781_v24 }
0x1821   : > { %v2235_v52 = vcombine.high %v2231_v49, %v2231_v49  ;;  %2248 = vst.msk [vmem:[%s639_s29 + $0x3] sm:$0x1] %vm2244_vm11, %v2234_v51  ;;  %2250 = vst.msk [vmem:[%s639_s29 + $0x5] sm:$0x1] %vm2244_vm11, %v2231_v49 }
0x1822   : > { %2251 = vst.msk [vmem:[%s639_s29 + $0x6] sm:$0x1] %vm2244_vm11, %v2233_v50 }
0x1823   : > { %2252 = vst.msk [vmem:[%s639_s29 + $0x7] sm:$0x1] %vm2244_vm11, %v2235_v52 }
0x18db   : > { %v2004_v26 = vpop.f32.mrf.mxu0 }
0x18dc   : > { %v2010_v53 = vpack.c.bf16 %v2004_v26, %v2004_v26 }
0x18dd   : > { %v2695_v54 = vpop.f32.mrf.mxu0 }
0x18de   : > { %2710 = vmatmul.mubr.msk.bf16.vlgmr.msra.gmra.mxu0 %vm895_vm1, %v2010_v53 }
0x18df   : > { %v2007_v55 = vpop.f32.mrf.mxu0 }
0x18e1   : > { %v2696_v56 = vpop.f32.mrf.mxu0 }
0x18e2   : > { %2865 = shalt.err (!%p2862_p7)
}
0x18e3   : > { %s2866_s28 = scalar_lea.hbm %s3457_s0, 128  ;;  %s2870_s25 = scalar_lea.hbm %s3607_s10, 256 }
0x18e4   : > { %p2867_p10 = scmp.ne.s32.totalorder %s3457_s0, %s2866_s28  ;;  %p2871_p13 = scmp.lt.s32.totalorder %s3457_s0, %s3607_s10 }
0x18e5   : > { %p2872_p0 = scmp.lt.s32.totalorder %s2870_s25, %s2866_s28 }
0x18e6   : > { %p2868_p11 = pnand %p2867_p10, %p3120_p6 }
0x18e7   : > { %p2873_p1 = por %p2872_p0, %p2871_p13 }
0x18e8   : > { %p2869_p12 = pneg %p2868_p11 }
0x18ea   : > { %p2874_p2 = pnand %p2873_p1, %p2869_p12 }
0x18ec   : > { %2877 = shalt.err (!%p2874_p2)
}
0x18ed   : > { %s3614_s3 = smov 16   ;;  %s3008_s26 = smov 1  }
0x18ee   : > { %s3635_s18 = smov 32   ;;  %s2308_s28 = scalar_lea.hbm %s3608_s11, %s3451_s13 }
0x18ef   : > { %2714 = dma.vmem_to_hbm [thread:$0]  (%p3120_p6), %s3461_s1, 128, %s3457_s0, %s3463_s2, %s3614_s3, %s3635_s18, %s3008_s26  }
0x18f0   : > { %s2878_s29 = scalar_lea.vmem %s3459_s16, 16  ;;  %s3009_s17 = smov [#allocation8]  }
0x18f1   : > { %p2879_p3 = scmp.ne.s32.totalorder %s3459_s16, %s2878_s29  ;;  %s2882_s25 = sshll.u32 %s3009_s17, 4  ;;  %s2883_s25 = int_to_ptr.vmem [resolvable:$false] %s2882_s25 }
0x18f2   : > { %s2884_s6 = scalar_lea.vmem %s2883_s25, 32  ;;  %p2885_p7 = scmp.lt.s32.totalorder %s3459_s16, %s2883_s25 }
0x18f3   : > { %p2880_p4 = pnand %p2879_p3, %p3120_p6  ;;  %p2886_p10 = scmp.lt.s32.totalorder %s2884_s6, %s2878_s29 }
0x18f5   : > { %p2881_p5 = pneg %p2880_p4  ;;  %p2887_p11 = por %p2886_p10, %p2885_p7 }
0x18f7   : > { %p2888_p12 = pnand %p2887_p11, %p2881_p5 }
0x18f9   : > { %2891 = shalt.err (!%p2888_p12)
}
0x18fa   : > { %s2892_s7 = scalar_lea.hbm %s2308_s28, 16  ;;  %s2896_s4 = scalar_lea.hbm %s3608_s11, 32 }
0x18fb   : > { %p2893_p13 = scmp.ne.s32.totalorder %s2308_s28, %s2892_s7  ;;  %p2897_p2 = scmp.lt.s32.totalorder %s2308_s28, %s3608_s11 }
0x18fc   : > { %p2898_p3 = scmp.lt.s32.totalorder %s2896_s4, %s2892_s7 }
0x18fd   : > { %p2894_p0 = pnand %p2893_p13, %p3120_p6 }
0x18fe   : > { %p2899_p4 = por %p2898_p3, %p2897_p2 }
0x18ff   : > { %p2895_p1 = pneg %p2894_p0 }
0x1901   : > { %p2900_p9 = pnand %p2899_p4, %p2895_p1 }
0x1903   : > { %2903 = shalt.err (!%p2900_p9)
}
0x1904   : > { %2715 = dma.vmem_to_hbm [thread:$0]  (%p3120_p6), %s3459_s16, 16, %s2308_s28, %s3463_s2  }
0x1905   : > { %s2321_s17 = scalar_lea.hbm %s3609_s12, %s3451_s13  ;;  %s3636_s25 = scalar_lea.vmem [#allocation9], %s3190_s19 }
0x1906   : > { %s2323_s3 = sshll.u32 %s3636_s25, 4  ;;  %s2268_s7 = scalar_lea.sflag [#allocation10], %s3190_s19  ;;  %s2324_s3 = int_to_ptr.vmem [resolvable:$true] %s2323_s3 }
0x1907   : > { %s2904_s0 = scalar_lea.vmem %s2324_s3, 16  ;;  %s3010_s1 = smov [#allocation9]  }
0x1908   : > { %p2905_p5 = scmp.ne.s32.totalorder %s2324_s3, %s2904_s0  ;;  %s2908_s4 = sshll.u32 %s3010_s1, 4  ;;  %s2909_s4 = int_to_ptr.vmem [resolvable:$false] %s2908_s4 }
0x1909   : > { %s2910_s5 = scalar_lea.vmem %s2909_s4, 32  ;;  %p2911_p10 = scmp.lt.s32.totalorder %s2324_s3, %s2909_s4 }
0x190a   : > { %p2906_p9 = pnand %p2905_p5, %p3120_p6  ;;  %p2912_p11 = scmp.lt.s32.totalorder %s2910_s5, %s2904_s0 }
0x190c   : > { %p2907_p7 = pneg %p2906_p9  ;;  %p2913_p12 = por %p2912_p11, %p2911_p10 }
0x190e   : > { %p2914_p13 = pnand %p2913_p12, %p2907_p7 }
0x1910   : > { %2917 = shalt.err (!%p2914_p13)
}
0x1911   : > { %s2918_s2 = scalar_lea.hbm %s2321_s17, 16  ;;  %s2922_s6 = scalar_lea.hbm %s3609_s12, 32 }
0x1912   : > { %p2919_p0 = scmp.ne.s32.totalorder %s2321_s17, %s2918_s2  ;;  %p2923_p3 = scmp.lt.s32.totalorder %s2321_s17, %s3609_s12 }
0x1913   : > { %p2924_p4 = scmp.lt.s32.totalorder %s2922_s6, %s2918_s2 }
0x1914   : > { %p2920_p1 = pnand %p2919_p0, %p3120_p6 }
0x1915   : > { %p2925_p5 = por %p2924_p4, %p2923_p3 }
0x1916   : > { %p2921_p2 = pneg %p2920_p1 }
0x1918   : > { %p2926_p9 = pnand %p2925_p5, %p2921_p2 }
0x191a   : > { %2929 = shalt.err (!%p2926_p9)
}
0x191b   : > { %2716 = dma.vmem_to_hbm [thread:$0]  (%p3120_p6), %s2324_s3, 16, %s2321_s17, %s2268_s7   ;;  %vm2177_vm12 = vcmask 253952  }
0x191c   : > { %s632_s17 = scalar_lea.vmem [#allocation4], %s3196_s20  ;;  %s3548_s0 = scalar_lea.hbm %s3606_s9, %s3451_s13 }
0x191d   : > { %s2279_s3 = sshll.u32 %s632_s17, 4  ;;  %s2254_s1 = scalar_lea.sflag [#allocation5], %s3190_s19  ;;  %s3550_s3 = int_to_ptr.vmem [resolvable:$true] %s2279_s3 }
0x191e   : > { %s2930_s4 = scalar_lea.vmem %s3550_s3, 128  ;;  %s3011_s5 = smov [#allocation4]  }
0x191f   : > { %p2931_p7 = scmp.ne.s32.totalorder %s3550_s3, %s2930_s4  ;;  %s2934_s2 = sshll.u32 %s3011_s5, 4  ;;  %s2935_s2 = int_to_ptr.vmem [resolvable:$false] %s2934_s2 }
0x1920   : > { %s2936_s16 = scalar_lea.vmem %s2935_s2, 256  ;;  %p2937_p12 = scmp.lt.s32.totalorder %s3550_s3, %s2935_s2 }
0x1921   : > { %p2932_p10 = pnand %p2931_p7, %p3120_p6  ;;  %p2938_p13 = scmp.lt.s32.totalorder %s2936_s16, %s2930_s4 }
0x1923   : > { %p2933_p11 = pneg %p2932_p10  ;;  %p2939_p0 = por %p2938_p13, %p2937_p12 }
0x1925   : > { %p2940_p1 = pnand %p2939_p0, %p2933_p11 }
0x199e   : > { %v2112_v57 = vpop.f32.mrf.mxu0 }
0x199f   : > { %v2113_v58 = vadd.f32 %v2112_v57, %v3410_v20 }
0x19a0   : > { %v2711_v59 = vpop.f32.mrf.mxu0 }
0x19a1   : > { %2850 = vtanh.f32 %v2113_v58 }
0x19a2   : > { %v2115_v60 = vpop.f32.mrf.mxu0 }
0x19a4   : > { %v2712_v61 = vpop.f32.mrf.mxu0 }
0x19ae   : > { %v2851_v62 = vpop.eup %2850 }
0x19af   : > { %v2120_v63 = vcombine.high %v2851_v62, %v2851_v62  ;;  %v2127_v0 = vrot.slane %v2851_v62, %v3206_v36 }
0x19b1   : > { %v2134_v1 = vrot.slane %v2120_v63, %v3206_v36  ;;  %v2135_v2 = vcombine.high %v2127_v0, %v2127_v0  ;;  %v2143_v3 = vrot.slane %v2127_v0, %v3206_v36 }
0x19b3   : > { %v2136_v4 = vcombine.high %v2134_v1, %v2134_v1  ;;  %v2150_v5 = vrot.slane %v2134_v1, %v3206_v36  ;;  %v2157_v6 = vrot.slane %v2135_v2, %v3206_v36  ;;  %v2165_v7 = vcombine.high %v2143_v3, %v2143_v3  ;;  %2178 = vst.msk [vmem:[%s632_s17] sm:$0x1] %vm2177_vm12, %v2143_v3 }
0x19b5   : > { %v2164_v8 = vrot.slane %v2136_v4, %v3206_v36  ;;  %v2166_v9 = vcombine.high %v2150_v5, %v2150_v5  ;;  %v2167_v10 = vcombine.high %v2157_v6, %v2157_v6  ;;  %2179 = vst.msk [vmem:[%s632_s17 + $0x1] sm:$0x1] %vm2177_vm12, %v2157_v6  ;;  %2180 = vst.msk [vmem:[%s632_s17 + $0x2] sm:$0x1] %vm2177_vm12, %v2165_v7 }
0x19b6   : > { %2182 = vst.msk [vmem:[%s632_s17 + $0x4] sm:$0x1] %vm2177_vm12, %v2150_v5 }
0x19b7   : > { %v2168_v11 = vcombine.high %v2164_v8, %v2164_v8  ;;  %2181 = vst.msk [vmem:[%s632_s17 + $0x3] sm:$0x1] %vm2177_vm12, %v2167_v10  ;;  %2183 = vst.msk [vmem:[%s632_s17 + $0x5] sm:$0x1] %vm2177_vm12, %v2164_v8 }
0x19b8   : > { %2184 = vst.msk [vmem:[%s632_s17 + $0x6] sm:$0x1] %vm2177_vm12, %v2166_v9 }
0x19b9   : > { %2185 = vst.msk [vmem:[%s632_s17 + $0x7] sm:$0x1] %vm2177_vm12, %v2168_v11 }
0x19ba   : > { %2943 = shalt.err (!%p2940_p1)
}
0x19bb   : > { %s2944_s13 = scalar_lea.hbm %s3548_s0, 128  ;;  %s2948_s6 = scalar_lea.hbm %s3606_s9, 256 }
0x19bc   : > { %p2945_p2 = scmp.ne.s32.totalorder %s3548_s0, %s2944_s13  ;;  %p2949_p5 = scmp.lt.s32.totalorder %s3548_s0, %s3606_s9 }
0x19bd   : > { %p2950_p9 = scmp.lt.s32.totalorder %s2948_s6, %s2944_s13 }
0x19be   : > { %p2946_p3 = pnand %p2945_p2, %p3120_p6 }
0x19bf   : > { %p2951_p7 = por %p2950_p9, %p2949_p5 }
0x19c0   : > { %p2947_p4 = pneg %p2946_p3 }
0x19c2   : > { %p2952_p10 = pnand %p2951_p7, %p2947_p4 }
0x19c4   : > { %2955 = shalt.err (!%p2952_p10)
}
0x19c5   : > { %s3637_s17 = smov 16  }
0x19c6   : > { %2713 = dma.vmem_to_hbm [thread:$0]  (%p3120_p6), %s3550_s3, 128, %s3548_s0, %s2254_s1, %s3637_s17, %s3635_s18, %s3008_s26  }
0x19c7 PF: > { %s2335_s20 = sand.u32 1, %s2986_s21   ;;  %p3638_p11 = scmp.ge.s32.totalorder %s2998_s24, 2 }
0x19c8   : > { %s2336_s7 = scalar_lea.sflag [#allocation5], %s2335_s20 }
0x19c9   : > { %p2722_p12 = pnand %p3638_p11, %p3126_p8 }
0x19cb   : > { %p2723_p13 = pneg %p2722_p12 }
0x19cd   : > { %2973 = dma.done.wait (%p2723_p13), %s2336_s7, 128  }
0x19ce   : > { %2975 = vsyncadd (%p2723_p13), %s2336_s7, 4294967168  ;;  %s3639_s14 = sadd.s32 4294967294, %s2998_s24  }
0x19cf   : > { %s2344_s4 = sand.u32 1, %s3639_s14  }
0x19d0   : > { %s2345_s5 = scalar_lea.sflag [#allocation7], %s2344_s4 }
0x19d1   : > { %2977 = dma.done.wait (%p2723_p13), %s2345_s5, 144  }
0x19d2   : > { %2979 = vsyncadd (%p2723_p13), %s2345_s5, 4294967152  ;;  %s2362_s2 = scalar_lea.sflag [#allocation10], %s2335_s20 }
0x19d3   : > { %2981 = dma.done.wait (%p2723_p13), %s2362_s2, 16  }
0x19d4   : > { %2983 = vsyncadd (%p2723_p13), %s2362_s2, 4294967280  ;;  %p29_p6 = scmp.ge.s32.totalorder %s3102_s27, 4   ;;  %s3640_s21 = smov %s2990_s22 }
0x19d5   : > { %s3641_s22 = smov %s2994_s23  ;;  %s3642_s23 = smov %s3114_s30 }
0x19d6   : > { %s3643_s24 = smov %s3102_s27  ;;  %31 = sbr.rel (!%p29_p6) target bundleno = 16 (0x10), region = 241 }
0x19db   :  { %2366 = vsyncpa [#allocation5], 1 }
0x19dc   :  { %2368 = vsyncpa [#allocation5 + $0x1], 1 }
0x19dd   :  { %2369 = vsyncpa [#allocation7], 1 }
0x19de   :  { %2371 = vsyncpa [#allocation7 + $0x1], 1 }
0x19df   :  { %2372 = vsyncpa [#allocation10], 1 }
0x19e0   :  { %2374 = vsyncpa [#allocation10 + $0x1], 1 }

</bundles_post_ra>
